<compile_context>
chip_gen: v7x
topology: tpu7x:2x2x1
jax: 0.10.0
libtpu: 0.0.40
codegen_flags: <defaults>
</compile_context>

<pallas_src>
import jax
import jax.numpy as jnp
import numpy as np
from jax import lax
from jax.experimental import pallas as pl
from jax.experimental.pallas import tpu as pltpu  # noqa: F401  (TPU backend import)

LN_EPS = 1e-5  # PyTorch nn.LayerNorm default


# ------------------------- in-kernel math helpers -------------------------

def _erf(x):
    # Abramowitz & Stegun 7.1.26 rational approximation, |abs err| <= 1.5e-7.
    # Exact divide kept on purpose (approx reciprocal here would eat the error budget).
    p = 0.3275911
    a1, a2, a3, a4, a5 = 0.254829592, -0.284496736, 1.421413741, -1.453152027, 1.061405429
    sgn = jnp.where(x >= 0.0, 1.0, -1.0)
    ax = jnp.abs(x)
    t = 1.0 / (1.0 + p * ax)
    poly = ((((a5 * t + a4) * t + a3) * t + a2) * t + a1) * t
    return sgn * (1.0 - poly * jnp.exp(-ax * ax))


def _gelu_exact(x):
    # PyTorch nn.GELU() default = exact (erf-based) GELU.
    return 0.5 * x * (1.0 + _erf(x * 0.7071067811865476))


def _layernorm(x, gamma, beta):
    mu = jnp.mean(x, axis=-1, keepdims=True)
    xc = x - mu
    var = jnp.mean(xc * xc, axis=-1, keepdims=True)
    return xc * lax.rsqrt(var + LN_EPS) * gamma + beta


def _adapter_stack(x, w1, b1, gamma, beta, w2, b2):
    # Linear -> LayerNorm -> GELU -> Linear (the nn.Sequential in the module)
    h = jnp.dot(x, w1, preferred_element_type=jnp.float32) + b1
    h = _gelu_exact(_layernorm(h, gamma, beta))
    return jnp.dot(h, w2, preferred_element_type=jnp.float32) + b2


# ------------------------------- kernel bodies --------------------------------

def _fused_plain_kernel(pe_ref, sqw_ref, vecs_ref, out_ref):
    # feature_context is None path: out[l] = layer_adapter_l(base_prompts[l]) for all l.
    num_layers = pe_ref.shape[0]
    cols = []
    for l in range(num_layers):                       # static unrolled layer loop
        v = vecs_ref[l]                               # [7, E]
        sqw = sqw_ref[l]                              # [3, E, E]
        pe = pe_ref[l]                                # [3, P, E]
        adapted = _adapter_stack(pe[0].astype(jnp.float32),
                                 sqw[0], v[0:1, :], v[1:2, :], v[2:3, :],
                                 sqw[1], v[3:4, :])   # [P, E]
        cols.append(adapted)
    # Single lane-dense store: [P, L*E] (= [8, 128] at test shapes).
    out_ref[...] = jnp.concatenate(cols, axis=-1).astype(out_ref.dtype)


def _fused_adaptive_kernel(pe_ref, sqw_ref, vecs_ref, feat_ref, out_ref):
    num_layers = pe_ref.shape[0]
    feat = feat_ref[...].astype(jnp.float32)          # [B, E], cast once in-kernel (VPU, free)
    cols = []
    for l in range(num_layers):                       # static unrolled layer loop
        v = vecs_ref[l]                               # [7, E]
        sqw = sqw_ref[l]                              # [3, E, E]
        pe = pe_ref[l]                                # [3, P, E]

        # adapted_prompt = layer_adapter(prompt)      [P, E]
        adapted = _adapter_stack(pe[0].astype(jnp.float32),
                                 sqw[0], v[0:1, :], v[1:2, :], v[2:3, :],
                                 sqw[1], v[3:4, :])

        # feature adapter hidden                      [B, E]
        h = jnp.dot(feat, sqw[2], preferred_element_type=jnp.float32) + v[4:5, :]
        h = _gelu_exact(_layernorm(h, v[5:6, :], v[6:7, :]))

        # logits^T [P, B] (q@k^T pattern): prompt axis stays on sublanes so the
        # softmax batch-mean lands as a [P, 1] column and the final scale is a
        # pure VPU broadcast multiply (no lane->sublane relayout, no MXU diag).
        logits_t = lax.dot_general(pe[1].astype(jnp.float32), h,
                                   (((1,), (1,)), ((), ())),
                                   preferred_element_type=jnp.float32)
        logits_t = logits_t + pe[2, :, 0:1]           # + fa_b2 column [P, 1] (folded into pe_pack)
        logits_t = logits_t - jnp.max(logits_t, axis=0, keepdims=True)
        ew = jnp.exp(logits_t)
        inv = pl.reciprocal(jnp.sum(ew, axis=0, keepdims=True), approx=True)  # EUP slot
        wsm_t = ew * inv                              # softmax over prompts (axis 0)
        m_col = jnp.mean(wsm_t, axis=1, keepdims=True)  # mean over batch -> [P, 1]

        cols.append(adapted * m_col)
    # Single lane-dense store: [P, L*E] (= [8, 128] at test shapes).
    out_ref[...] = jnp.concatenate(cols, axis=-1).astype(out_ref.dtype)


# --------------------------------- wrappers -----------------------------------

def prompt_generator_forward_all_layers(params, feature_context=None):
    """All L layers in ONE un-gridded pallas_call. Returns [L, num_prompts, embed_dim]."""
    pe_pack = params["pe_pack"]                       # [L, 3, P, E]
    L, _, P, E = pe_pack.shape
    out_shape = jax.ShapeDtypeStruct((P, L * E), jnp.float32)   # lane-dense packed output

    if feature_context is None or feature_context.shape[0] == 0:
        packed = pl.pallas_call(_fused_plain_kernel, out_shape=out_shape)(
            pe_pack, params["sq_w"], params["vecs"])
    else:
        packed = pl.pallas_call(_fused_adaptive_kernel, out_shape=out_shape)(
            pe_pack, params["sq_w"], params["vecs"], feature_context)

    # [P, L*E] -> [L, P, E]: tiny XLA-side relayout, outside the kernel.
    return packed.reshape(P, L, E).transpose(1, 0, 2)


def prompt_generator_forward(params, layer_idx, feature_context=None):
    """PromptGenerator.forward(layer_idx, feature_context) -> [num_prompts, embed_dim].

    Routed through the fused all-layers kernel and sliced: a single fused launch hides
    the per-layer weight DMA that a one-layer launch would fully expose.
    """
    return prompt_generator_forward_all_layers(params, feature_context)[layer_idx]


# -------------------------------- parameters ----------------------------------

def init_params(key, embed_dim=32, num_prompts=8, num_layers=4, prompt_init_std=0.02):
    E, P, L = embed_dim, num_prompts, num_layers
    ks = jax.random.split(key, 9)

    def nrm(k, shape, scale=0.02):
        return jax.random.normal(k, shape, jnp.float32) * scale

    base = nrm(ks[0], (L, P, E), prompt_init_std)
    la_w1 = nrm(ks[1], (L, E, E)); la_b1 = nrm(ks[2], (L, E))
    la_w2 = nrm(ks[3], (L, E, E)); la_b2 = nrm(ks[4], (L, E))
    fa_w1 = nrm(ks[5], (L, E, E)); fa_b1 = nrm(ks[6], (L, E))
    fa_w2 = nrm(ks[7], (L, P, E))                     # native [out=P, in=E] layout
    fa_b2 = nrm(ks[8], (L, P))
    ones = jnp.ones((L, E), jnp.float32)
    zeros = jnp.zeros((L, E), jnp.float32)

    return {
        # packed square weights: (la_w1, la_w2, fa_w1), each used as x @ W (+ b)
        "sq_w": jnp.stack([la_w1, la_w2, fa_w1], axis=1),                        # [L,3,E,E]
        # packed 1-D params: (la_b1, la_ln_g, la_ln_b, la_b2, fa_b1, fa_ln_g, fa_ln_b)
        "vecs": jnp.stack([la_b1, ones, zeros, la_b2, fa_b1, ones, zeros], 1),   # [L,7,E]
        # packed [P, E]-shaped params: (base_prompts, fa_w2, fa_b2 broadcast over E)
        "pe_pack": jnp.stack(
            [base, fa_w2, jnp.broadcast_to(fa_b2[:, :, None], (L, P, E))], axis=1),  # [L,3,P,E]
    }


# ----------------------------- pure-JAX reference ------------------------------

def reference_forward(params, layer_idx, feature_context=None):
    sq_w = params["sq_w"][layer_idx]                  # [3, E, E]
    vecs = params["vecs"][layer_idx]                  # [7, E]
    pe = params["pe_pack"][layer_idx]                 # [3, P, E]
    prompt, fa_w2, fa_b2 = pe[0], pe[1], pe[2, :, 0]

    def ln(h, g, be):
        mu = h.mean(-1, keepdims=True)
        var = ((h - mu) ** 2).mean(-1, keepdims=True)
        return (h - mu) / jnp.sqrt(var + LN_EPS) * g + be

    h = prompt @ sq_w[0] + vecs[0]
    h = jax.nn.gelu(ln(h, vecs[1], vecs[2]), approximate=False)
    adapted = h @ sq_w[1] + vecs[3]
    if feature_context is None or feature_context.shape[0] == 0:
        return adapted

    f = feature_context.astype(jnp.float32)
    h = f @ sq_w[2] + vecs[4]
    h = jax.nn.gelu(ln(h, vecs[5], vecs[6]), approximate=False)
    logits = h @ fa_w2.T + fa_b2
    w = jax.nn.softmax(logits, axis=-1)               # [B, P]
    weighted = adapted[None, :, :] * w[:, :, None]
    return weighted.mean(axis=0)


# ------------------------------------ main -------------------------------------

if __name__ == "__main__":
    E, P, L, B = 32, 8, 4, 2
    layer_idx = 1

    key = jax.random.PRNGKey(0)
    k_param, k_feat = jax.random.split(key)
    params = init_params(k_param, embed_dim=E, num_prompts=P, num_layers=L)
    feature_context = jax.random.normal(k_feat, (B, E), jnp.float32)

    # Per-layer, adaptive path (feature_context provided)
    out = jax.block_until_ready(prompt_generator_forward(params, layer_idx, feature_context))
    ref = reference_forward(params, layer_idx, feature_context)
    assert out.shape == (P, E) and out.dtype == jnp.float32
    np.testing.assert_allclose(np.asarray(out), np.asarray(ref), rtol=2e-2, atol=2e-4)

    # Per-layer, feature_context=None path
    out2 = jax.block_until_ready(prompt_generator_forward(params, layer_idx, None))
    ref2 = reference_forward(params, layer_idx, None)
    np.testing.assert_allclose(np.asarray(out2), np.asarray(ref2), rtol=2e-2, atol=2e-4)

    # Fused all-layers, adaptive path
    out_all = jax.block_until_ready(prompt_generator_forward_all_layers(params, feature_context))
    ref_all = jnp.stack([reference_forward(params, l, feature_context) for l in range(L)])
    assert out_all.shape == (L, P, E)
    np.testing.assert_allclose(np.asarray(out_all), np.asarray(ref_all), rtol=2e-2, atol=2e-4)

    # Fused all-layers, feature_context=None path
    out_all2 = jax.block_until_ready(prompt_generator_forward_all_layers(params, None))
    ref_all2 = jnp.stack([reference_forward(params, l, None) for l in range(L)])
    np.testing.assert_allclose(np.asarray(out_all2), np.asarray(ref_all2), rtol=2e-2, atol=2e-4)

    print("KERNEL_OK")
</pallas_src>

<mosaic_0001>
module attributes {stable_mosaic.version = 11 : i64} {
  func.func @_fused_adaptive_kernel(%arg0: memref<4x3x8x32xf32, #tpu.memory_space<vmem>>, %arg1: memref<4x3x32x32xf32, #tpu.memory_space<vmem>>, %arg2: memref<4x7x32xf32, #tpu.memory_space<vmem>>, %arg3: memref<2x32xf32, #tpu.memory_space<vmem>>, %arg4: memref<8x128xf32, #tpu.memory_space<vmem>>) attributes {dimension_semantics = [], scalar_prefetch = 0 : i64, scratch_operands = 0 : i64, tpu.core_type = #tpu.core_type<tc>} {
    %c0 = arith.constant 0 : index
    %c0_0 = arith.constant 0 : index
    %0 = vector.load %arg3[%c0, %c0_0] : memref<2x32xf32, #tpu.memory_space<vmem>>, vector<2x32xf32>
    %c0_1 = arith.constant 0 : index
    %c0_2 = arith.constant 0 : index
    %c0_3 = arith.constant 0 : index
    %1 = vector.load %arg2[%c0_1, %c0_2, %c0_3] : memref<4x7x32xf32, #tpu.memory_space<vmem>>, vector<1x7x32xf32>
    %2 = vector.shape_cast %1 : vector<1x7x32xf32> to vector<7x32xf32>
    %c0_4 = arith.constant 0 : index
    %c0_5 = arith.constant 0 : index
    %c0_6 = arith.constant 0 : index
    %c0_7 = arith.constant 0 : index
    %3 = vector.load %arg1[%c0_4, %c0_5, %c0_6, %c0_7] : memref<4x3x32x32xf32, #tpu.memory_space<vmem>>, vector<1x3x32x32xf32>
    %4 = vector.shape_cast %3 : vector<1x3x32x32xf32> to vector<3x32x32xf32>
    %c0_8 = arith.constant 0 : index
    %c0_9 = arith.constant 0 : index
    %c0_10 = arith.constant 0 : index
    %c0_11 = arith.constant 0 : index
    %5 = vector.load %arg0[%c0_8, %c0_9, %c0_10, %c0_11] : memref<4x3x8x32xf32, #tpu.memory_space<vmem>>, vector<1x3x8x32xf32>
    %6 = vector.shape_cast %5 : vector<1x3x8x32xf32> to vector<3x8x32xf32>
    %7 = vector.extract_strided_slice %6 {offsets = [0, 0, 0], sizes = [1, 8, 32], strides = [1, 1, 1]} : vector<3x8x32xf32> to vector<1x8x32xf32>
    %8 = vector.shape_cast %7 : vector<1x8x32xf32> to vector<8x32xf32>
    %9 = vector.extract_strided_slice %4 {offsets = [0, 0, 0], sizes = [1, 32, 32], strides = [1, 1, 1]} : vector<3x32x32xf32> to vector<1x32x32xf32>
    %10 = vector.shape_cast %9 : vector<1x32x32xf32> to vector<32x32xf32>
    %11 = vector.extract_strided_slice %2 {offsets = [0, 0], sizes = [1, 32], strides = [1, 1]} : vector<7x32xf32> to vector<1x32xf32>
    %12 = vector.extract_strided_slice %2 {offsets = [1, 0], sizes = [1, 32], strides = [1, 1]} : vector<7x32xf32> to vector<1x32xf32>
    %13 = vector.extract_strided_slice %2 {offsets = [2, 0], sizes = [1, 32], strides = [1, 1]} : vector<7x32xf32> to vector<1x32xf32>
    %14 = vector.extract_strided_slice %4 {offsets = [1, 0, 0], sizes = [1, 32, 32], strides = [1, 1, 1]} : vector<3x32x32xf32> to vector<1x32x32xf32>
    %15 = vector.shape_cast %14 : vector<1x32x32xf32> to vector<32x32xf32>
    %16 = vector.extract_strided_slice %2 {offsets = [3, 0], sizes = [1, 32], strides = [1, 1]} : vector<7x32xf32> to vector<1x32xf32>
    %cst = arith.constant dense<0.000000e+00> : vector<8x32xf32>
    %17 = tpu.matmul %8, %10, %cst {dimension_numbers = #tpu.dot_dimension_numbers<[1], [0], [0], [1], [0, 0, 1, 1], [], []>} : vector<8x32xf32>, vector<32x32xf32>, vector<8x32xf32> -> vector<8x32xf32>
    %18 = vector.broadcast %11 : vector<1x32xf32> to vector<8x32xf32>
    %19 = arith.addf %17, %18 : vector<8x32xf32>
    %cst_12 = arith.constant dense<0.000000e+00> : vector<8xf32>
    %20 = vector.multi_reduction <add>, %19, %cst_12 [1] : vector<8x32xf32> to vector<8xf32>
    %21 = vector.shape_cast %20 : vector<8xf32> to vector<8x1xf32>
    %cst_13 = arith.constant 3.200000e+01 : f32
    %22 = vector.broadcast %cst_13 : f32 to vector<8x1xf32>
    %23 = arith.divf %21, %22 : vector<8x1xf32>
    %24 = vector.broadcast %23 : vector<8x1xf32> to vector<8x32xf32>
    %25 = arith.subf %19, %24 : vector<8x32xf32>
    %26 = arith.mulf %25, %25 : vector<8x32xf32>
    %cst_14 = arith.constant dense<0.000000e+00> : vector<8xf32>
    %27 = vector.multi_reduction <add>, %26, %cst_14 [1] : vector<8x32xf32> to vector<8xf32>
    %28 = vector.shape_cast %27 : vector<8xf32> to vector<8x1xf32>
    %cst_15 = arith.constant 3.200000e+01 : f32
    %29 = vector.broadcast %cst_15 : f32 to vector<8x1xf32>
    %30 = arith.divf %28, %29 : vector<8x1xf32>
    %cst_16 = arith.constant 9.99999974E-6 : f32
    %31 = vector.broadcast %cst_16 : f32 to vector<8x1xf32>
    %32 = arith.addf %30, %31 : vector<8x1xf32>
    %33 = math.rsqrt %32 : vector<8x1xf32>
    %34 = vector.broadcast %33 : vector<8x1xf32> to vector<8x32xf32>
    %35 = arith.mulf %25, %34 : vector<8x32xf32>
    %36 = vector.broadcast %12 : vector<1x32xf32> to vector<8x32xf32>
    %37 = arith.mulf %35, %36 : vector<8x32xf32>
    %38 = vector.broadcast %13 : vector<1x32xf32> to vector<8x32xf32>
    %39 = arith.addf %37, %38 : vector<8x32xf32>
    %cst_17 = arith.constant 5.000000e-01 : f32
    %40 = vector.broadcast %cst_17 : f32 to vector<8x32xf32>
    %41 = arith.mulf %40, %39 : vector<8x32xf32>
    %cst_18 = arith.constant 0.707106769 : f32
    %42 = vector.broadcast %cst_18 : f32 to vector<8x32xf32>
    %43 = arith.mulf %39, %42 : vector<8x32xf32>
    %cst_19 = arith.constant 0.000000e+00 : f32
    %44 = vector.broadcast %cst_19 : f32 to vector<8x32xf32>
    %45 = arith.cmpf oge, %43, %44 : vector<8x32xf32>
    %cst_20 = arith.constant 1.000000e+00 : f32
    %cst_21 = arith.constant -1.000000e+00 : f32
    %46 = vector.broadcast %cst_20 : f32 to vector<8x32xf32>
    %47 = vector.broadcast %cst_21 : f32 to vector<8x32xf32>
    %48 = arith.select %45, %46, %47 : vector<8x32xi1>, vector<8x32xf32>
    %49 = math.absf %43 : vector<8x32xf32>
    %cst_22 = arith.constant 0.327591091 : f32
    %50 = vector.broadcast %cst_22 : f32 to vector<8x32xf32>
    %51 = arith.mulf %50, %49 : vector<8x32xf32>
    %cst_23 = arith.constant 1.000000e+00 : f32
    %52 = vector.broadcast %cst_23 : f32 to vector<8x32xf32>
    %53 = arith.addf %52, %51 : vector<8x32xf32>
    %cst_24 = arith.constant 1.000000e+00 : f32
    %54 = vector.broadcast %cst_24 : f32 to vector<8x32xf32>
    %55 = arith.divf %54, %53 : vector<8x32xf32>
    %cst_25 = arith.constant 1.06140542 : f32
    %56 = vector.broadcast %cst_25 : f32 to vector<8x32xf32>
    %57 = arith.mulf %56, %55 : vector<8x32xf32>
    %cst_26 = arith.constant -1.45315206 : f32
    %58 = vector.broadcast %cst_26 : f32 to vector<8x32xf32>
    %59 = arith.addf %57, %58 : vector<8x32xf32>
    %60 = arith.mulf %59, %55 : vector<8x32xf32>
    %cst_27 = arith.constant 1.42141378 : f32
    %61 = vector.broadcast %cst_27 : f32 to vector<8x32xf32>
    %62 = arith.addf %60, %61 : vector<8x32xf32>
    %63 = arith.mulf %62, %55 : vector<8x32xf32>
    %cst_28 = arith.constant -0.284496725 : f32
    %64 = vector.broadcast %cst_28 : f32 to vector<8x32xf32>
    %65 = arith.addf %63, %64 : vector<8x32xf32>
    %66 = arith.mulf %65, %55 : vector<8x32xf32>
    %cst_29 = arith.constant 0.254829586 : f32
    %67 = vector.broadcast %cst_29 : f32 to vector<8x32xf32>
    %68 = arith.addf %66, %67 : vector<8x32xf32>
    %69 = arith.mulf %68, %55 : vector<8x32xf32>
    %cst_30 = arith.constant 0.000000e+00 : f32
    %70 = vector.broadcast %cst_30 : f32 to vector<8x32xf32>
    %71 = arith.subf %70, %49 : vector<8x32xf32>
    %72 = arith.mulf %71, %49 : vector<8x32xf32>
    %73 = math.exp %72 : vector<8x32xf32>
    %74 = arith.mulf %69, %73 : vector<8x32xf32>
    %cst_31 = arith.constant 1.000000e+00 : f32
    %75 = vector.broadcast %cst_31 : f32 to vector<8x32xf32>
    %76 = arith.subf %75, %74 : vector<8x32xf32>
    %77 = arith.mulf %48, %76 : vector<8x32xf32>
    %cst_32 = arith.constant 1.000000e+00 : f32
    %78 = vector.broadcast %cst_32 : f32 to vector<8x32xf32>
    %79 = arith.addf %78, %77 : vector<8x32xf32>
    %80 = arith.mulf %41, %79 : vector<8x32xf32>
    %cst_33 = arith.constant dense<0.000000e+00> : vector<8x32xf32>
    %81 = tpu.matmul %80, %15, %cst_33 {dimension_numbers = #tpu.dot_dimension_numbers<[1], [0], [0], [1], [0, 0, 1, 1], [], []>} : vector<8x32xf32>, vector<32x32xf32>, vector<8x32xf32> -> vector<8x32xf32>
    %82 = vector.broadcast %16 : vector<1x32xf32> to vector<8x32xf32>
    %83 = arith.addf %81, %82 : vector<8x32xf32>
    %84 = vector.extract_strided_slice %4 {offsets = [2, 0, 0], sizes = [1, 32, 32], strides = [1, 1, 1]} : vector<3x32x32xf32> to vector<1x32x32xf32>
    %85 = vector.shape_cast %84 : vector<1x32x32xf32> to vector<32x32xf32>
    %cst_34 = arith.constant dense<0.000000e+00> : vector<2x32xf32>
    %86 = tpu.matmul %0, %85, %cst_34 {dimension_numbers = #tpu.dot_dimension_numbers<[1], [0], [0], [1], [0, 0, 1, 1], [], []>} : vector<2x32xf32>, vector<32x32xf32>, vector<2x32xf32> -> vector<2x32xf32>
    %87 = vector.extract_strided_slice %2 {offsets = [4, 0], sizes = [1, 32], strides = [1, 1]} : vector<7x32xf32> to vector<1x32xf32>
    %88 = vector.broadcast %87 : vector<1x32xf32> to vector<2x32xf32>
    %89 = arith.addf %86, %88 : vector<2x32xf32>
    %90 = vector.extract_strided_slice %2 {offsets = [5, 0], sizes = [1, 32], strides = [1, 1]} : vector<7x32xf32> to vector<1x32xf32>
    %91 = vector.extract_strided_slice %2 {offsets = [6, 0], sizes = [1, 32], strides = [1, 1]} : vector<7x32xf32> to vector<1x32xf32>
    %cst_35 = arith.constant dense<0.000000e+00> : vector<2xf32>
    %92 = vector.multi_reduction <add>, %89, %cst_35 [1] : vector<2x32xf32> to vector<2xf32>
    %93 = vector.shape_cast %92 : vector<2xf32> to vector<2x1xf32>
    %cst_36 = arith.constant 3.200000e+01 : f32
    %94 = vector.broadcast %cst_36 : f32 to vector<2x1xf32>
    %95 = arith.divf %93, %94 : vector<2x1xf32>
    %96 = vector.broadcast %95 : vector<2x1xf32> to vector<2x32xf32>
    %97 = arith.subf %89, %96 : vector<2x32xf32>
    %98 = arith.mulf %97, %97 : vector<2x32xf32>
    %cst_37 = arith.constant dense<0.000000e+00> : vector<2xf32>
    %99 = vector.multi_reduction <add>, %98, %cst_37 [1] : vector<2x32xf32> to vector<2xf32>
    %100 = vector.shape_cast %99 : vector<2xf32> to vector<2x1xf32>
    %cst_38 = arith.constant 3.200000e+01 : f32
    %101 = vector.broadcast %cst_38 : f32 to vector<2x1xf32>
    %102 = arith.divf %100, %101 : vector<2x1xf32>
    %cst_39 = arith.constant 9.99999974E-6 : f32
    %103 = vector.broadcast %cst_39 : f32 to vector<2x1xf32>
    %104 = arith.addf %102, %103 : vector<2x1xf32>
    %105 = math.rsqrt %104 : vector<2x1xf32>
    %106 = vector.broadcast %105 : vector<2x1xf32> to vector<2x32xf32>
    %107 = arith.mulf %97, %106 : vector<2x32xf32>
    %108 = vector.broadcast %90 : vector<1x32xf32> to vector<2x32xf32>
    %109 = arith.mulf %107, %108 : vector<2x32xf32>
    %110 = vector.broadcast %91 : vector<1x32xf32> to vector<2x32xf32>
    %111 = arith.addf %109, %110 : vector<2x32xf32>
    %cst_40 = arith.constant 5.000000e-01 : f32
    %112 = vector.broadcast %cst_40 : f32 to vector<2x32xf32>
    %113 = arith.mulf %112, %111 : vector<2x32xf32>
    %cst_41 = arith.constant 0.707106769 : f32
    %114 = vector.broadcast %cst_41 : f32 to vector<2x32xf32>
    %115 = arith.mulf %111, %114 : vector<2x32xf32>
    %cst_42 = arith.constant 0.000000e+00 : f32
    %116 = vector.broadcast %cst_42 : f32 to vector<2x32xf32>
    %117 = arith.cmpf oge, %115, %116 : vector<2x32xf32>
    %cst_43 = arith.constant 1.000000e+00 : f32
    %cst_44 = arith.constant -1.000000e+00 : f32
    %118 = vector.broadcast %cst_43 : f32 to vector<2x32xf32>
    %119 = vector.broadcast %cst_44 : f32 to vector<2x32xf32>
    %120 = arith.select %117, %118, %119 : vector<2x32xi1>, vector<2x32xf32>
    %121 = math.absf %115 : vector<2x32xf32>
    %cst_45 = arith.constant 0.327591091 : f32
    %122 = vector.broadcast %cst_45 : f32 to vector<2x32xf32>
    %123 = arith.mulf %122, %121 : vector<2x32xf32>
    %cst_46 = arith.constant 1.000000e+00 : f32
    %124 = vector.broadcast %cst_46 : f32 to vector<2x32xf32>
    %125 = arith.addf %124, %123 : vector<2x32xf32>
    %cst_47 = arith.constant 1.000000e+00 : f32
    %126 = vector.broadcast %cst_47 : f32 to vector<2x32xf32>
    %127 = arith.divf %126, %125 : vector<2x32xf32>
    %cst_48 = arith.constant 1.06140542 : f32
    %128 = vector.broadcast %cst_48 : f32 to vector<2x32xf32>
    %129 = arith.mulf %128, %127 : vector<2x32xf32>
    %cst_49 = arith.constant -1.45315206 : f32
    %130 = vector.broadcast %cst_49 : f32 to vector<2x32xf32>
    %131 = arith.addf %129, %130 : vector<2x32xf32>
    %132 = arith.mulf %131, %127 : vector<2x32xf32>
    %cst_50 = arith.constant 1.42141378 : f32
    %133 = vector.broadcast %cst_50 : f32 to vector<2x32xf32>
    %134 = arith.addf %132, %133 : vector<2x32xf32>
    %135 = arith.mulf %134, %127 : vector<2x32xf32>
    %cst_51 = arith.constant -0.284496725 : f32
    %136 = vector.broadcast %cst_51 : f32 to vector<2x32xf32>
    %137 = arith.addf %135, %136 : vector<2x32xf32>
    %138 = arith.mulf %137, %127 : vector<2x32xf32>
    %cst_52 = arith.constant 0.254829586 : f32
    %139 = vector.broadcast %cst_52 : f32 to vector<2x32xf32>
    %140 = arith.addf %138, %139 : vector<2x32xf32>
    %141 = arith.mulf %140, %127 : vector<2x32xf32>
    %cst_53 = arith.constant 0.000000e+00 : f32
    %142 = vector.broadcast %cst_53 : f32 to vector<2x32xf32>
    %143 = arith.subf %142, %121 : vector<2x32xf32>
    %144 = arith.mulf %143, %121 : vector<2x32xf32>
    %145 = math.exp %144 : vector<2x32xf32>
    %146 = arith.mulf %141, %145 : vector<2x32xf32>
    %cst_54 = arith.constant 1.000000e+00 : f32
    %147 = vector.broadcast %cst_54 : f32 to vector<2x32xf32>
    %148 = arith.subf %147, %146 : vector<2x32xf32>
    %149 = arith.mulf %120, %148 : vector<2x32xf32>
    %cst_55 = arith.constant 1.000000e+00 : f32
    %150 = vector.broadcast %cst_55 : f32 to vector<2x32xf32>
    %151 = arith.addf %150, %149 : vector<2x32xf32>
    %152 = arith.mulf %113, %151 : vector<2x32xf32>
    %153 = vector.extract_strided_slice %6 {offsets = [1, 0, 0], sizes = [1, 8, 32], strides = [1, 1, 1]} : vector<3x8x32xf32> to vector<1x8x32xf32>
    %154 = vector.shape_cast %153 : vector<1x8x32xf32> to vector<8x32xf32>
    %cst_56 = arith.constant dense<0.000000e+00> : vector<8x2xf32>
    %155 = tpu.matmul %154, %152, %cst_56 {dimension_numbers = #tpu.dot_dimension_numbers<[1], [1], [0], [0], [0, 0, 1, 0], [], []>} : vector<8x32xf32>, vector<2x32xf32>, vector<8x2xf32> -> vector<8x2xf32>
    %156 = vector.extract_strided_slice %6 {offsets = [2, 0, 0], sizes = [1, 8, 1], strides = [1, 1, 1]} : vector<3x8x32xf32> to vector<1x8x1xf32>
    %157 = vector.shape_cast %156 : vector<1x8x1xf32> to vector<8x1xf32>
    %158 = vector.broadcast %157 : vector<8x1xf32> to vector<8x2xf32>
    %159 = arith.addf %155, %158 : vector<8x2xf32>
    %cst_57 = arith.constant dense<0xFF800000> : vector<2xf32>
    %160 = vector.multi_reduction <maximumf>, %159, %cst_57 [0] : vector<8x2xf32> to vector<2xf32>
    %161 = vector.shape_cast %160 : vector<2xf32> to vector<1x2xf32>
    %162 = vector.broadcast %161 : vector<1x2xf32> to vector<8x2xf32>
    %163 = arith.subf %159, %162 : vector<8x2xf32>
    %164 = math.exp %163 : vector<8x2xf32>
    %cst_58 = arith.constant dense<0.000000e+00> : vector<2xf32>
    %165 = vector.multi_reduction <add>, %164, %cst_58 [0] : vector<8x2xf32> to vector<2xf32>
    %166 = vector.shape_cast %165 : vector<2xf32> to vector<1x2xf32>
    %167 = tpu.reciprocal %166 {approx = true} : vector<1x2xf32> -> vector<1x2xf32>
    %168 = vector.broadcast %167 : vector<1x2xf32> to vector<8x2xf32>
    %169 = arith.mulf %164, %168 : vector<8x2xf32>
    %cst_59 = arith.constant dense<0.000000e+00> : vector<8xf32>
    %170 = vector.multi_reduction <add>, %169, %cst_59 [1] : vector<8x2xf32> to vector<8xf32>
    %171 = vector.shape_cast %170 : vector<8xf32> to vector<8x1xf32>
    %cst_60 = arith.constant 2.000000e+00 : f32
    %172 = vector.broadcast %cst_60 : f32 to vector<8x1xf32>
    %173 = arith.divf %171, %172 : vector<8x1xf32>
    %174 = vector.broadcast %173 : vector<8x1xf32> to vector<8x32xf32>
    %175 = arith.mulf %83, %174 : vector<8x32xf32>
    %c1 = arith.constant 1 : index
    %c0_61 = arith.constant 0 : index
    %c0_62 = arith.constant 0 : index
    %176 = vector.load %arg2[%c1, %c0_61, %c0_62] : memref<4x7x32xf32, #tpu.memory_space<vmem>>, vector<1x7x32xf32>
    %177 = vector.shape_cast %176 : vector<1x7x32xf32> to vector<7x32xf32>
    %c1_63 = arith.constant 1 : index
    %c0_64 = arith.constant 0 : index
    %c0_65 = arith.constant 0 : index
    %c0_66 = arith.constant 0 : index
    %178 = vector.load %arg1[%c1_63, %c0_64, %c0_65, %c0_66] : memref<4x3x32x32xf32, #tpu.memory_space<vmem>>, vector<1x3x32x32xf32>
    %179 = vector.shape_cast %178 : vector<1x3x32x32xf32> to vector<3x32x32xf32>
    %c1_67 = arith.constant 1 : index
    %c0_68 = arith.constant 0 : index
    %c0_69 = arith.constant 0 : index
    %c0_70 = arith.constant 0 : index
    %180 = vector.load %arg0[%c1_67, %c0_68, %c0_69, %c0_70] : memref<4x3x8x32xf32, #tpu.memory_space<vmem>>, vector<1x3x8x32xf32>
    %181 = vector.shape_cast %180 : vector<1x3x8x32xf32> to vector<3x8x32xf32>
    %182 = vector.extract_strided_slice %181 {offsets = [0, 0, 0], sizes = [1, 8, 32], strides = [1, 1, 1]} : vector<3x8x32xf32> to vector<1x8x32xf32>
    %183 = vector.shape_cast %182 : vector<1x8x32xf32> to vector<8x32xf32>
    %184 = vector.extract_strided_slice %179 {offsets = [0, 0, 0], sizes = [1, 32, 32], strides = [1, 1, 1]} : vector<3x32x32xf32> to vector<1x32x32xf32>
    %185 = vector.shape_cast %184 : vector<1x32x32xf32> to vector<32x32xf32>
    %186 = vector.extract_strided_slice %177 {offsets = [0, 0], sizes = [1, 32], strides = [1, 1]} : vector<7x32xf32> to vector<1x32xf32>
    %187 = vector.extract_strided_slice %177 {offsets = [1, 0], sizes = [1, 32], strides = [1, 1]} : vector<7x32xf32> to vector<1x32xf32>
    %188 = vector.extract_strided_slice %177 {offsets = [2, 0], sizes = [1, 32], strides = [1, 1]} : vector<7x32xf32> to vector<1x32xf32>
    %189 = vector.extract_strided_slice %179 {offsets = [1, 0, 0], sizes = [1, 32, 32], strides = [1, 1, 1]} : vector<3x32x32xf32> to vector<1x32x32xf32>
    %190 = vector.shape_cast %189 : vector<1x32x32xf32> to vector<32x32xf32>
    %191 = vector.extract_strided_slice %177 {offsets = [3, 0], sizes = [1, 32], strides = [1, 1]} : vector<7x32xf32> to vector<1x32xf32>
    %cst_71 = arith.constant dense<0.000000e+00> : vector<8x32xf32>
    %192 = tpu.matmul %183, %185, %cst_71 {dimension_numbers = #tpu.dot_dimension_numbers<[1], [0], [0], [1], [0, 0, 1, 1], [], []>} : vector<8x32xf32>, vector<32x32xf32>, vector<8x32xf32> -> vector<8x32xf32>
    %193 = vector.broadcast %186 : vector<1x32xf32> to vector<8x32xf32>
    %194 = arith.addf %192, %193 : vector<8x32xf32>
    %cst_72 = arith.constant dense<0.000000e+00> : vector<8xf32>
    %195 = vector.multi_reduction <add>, %194, %cst_72 [1] : vector<8x32xf32> to vector<8xf32>
    %196 = vector.shape_cast %195 : vector<8xf32> to vector<8x1xf32>
    %cst_73 = arith.constant 3.200000e+01 : f32
    %197 = vector.broadcast %cst_73 : f32 to vector<8x1xf32>
    %198 = arith.divf %196, %197 : vector<8x1xf32>
    %199 = vector.broadcast %198 : vector<8x1xf32> to vector<8x32xf32>
    %200 = arith.subf %194, %199 : vector<8x32xf32>
    %201 = arith.mulf %200, %200 : vector<8x32xf32>
    %cst_74 = arith.constant dense<0.000000e+00> : vector<8xf32>
    %202 = vector.multi_reduction <add>, %201, %cst_74 [1] : vector<8x32xf32> to vector<8xf32>
    %203 = vector.shape_cast %202 : vector<8xf32> to vector<8x1xf32>
    %cst_75 = arith.constant 3.200000e+01 : f32
    %204 = vector.broadcast %cst_75 : f32 to vector<8x1xf32>
    %205 = arith.divf %203, %204 : vector<8x1xf32>
    %cst_76 = arith.constant 9.99999974E-6 : f32
    %206 = vector.broadcast %cst_76 : f32 to vector<8x1xf32>
    %207 = arith.addf %205, %206 : vector<8x1xf32>
    %208 = math.rsqrt %207 : vector<8x1xf32>
    %209 = vector.broadcast %208 : vector<8x1xf32> to vector<8x32xf32>
    %210 = arith.mulf %200, %209 : vector<8x32xf32>
    %211 = vector.broadcast %187 : vector<1x32xf32> to vector<8x32xf32>
    %212 = arith.mulf %210, %211 : vector<8x32xf32>
    %213 = vector.broadcast %188 : vector<1x32xf32> to vector<8x32xf32>
    %214 = arith.addf %212, %213 : vector<8x32xf32>
    %cst_77 = arith.constant 5.000000e-01 : f32
    %215 = vector.broadcast %cst_77 : f32 to vector<8x32xf32>
    %216 = arith.mulf %215, %214 : vector<8x32xf32>
    %cst_78 = arith.constant 0.707106769 : f32
    %217 = vector.broadcast %cst_78 : f32 to vector<8x32xf32>
    %218 = arith.mulf %214, %217 : vector<8x32xf32>
    %cst_79 = arith.constant 0.000000e+00 : f32
    %219 = vector.broadcast %cst_79 : f32 to vector<8x32xf32>
    %220 = arith.cmpf oge, %218, %219 : vector<8x32xf32>
    %cst_80 = arith.constant 1.000000e+00 : f32
    %cst_81 = arith.constant -1.000000e+00 : f32
    %221 = vector.broadcast %cst_80 : f32 to vector<8x32xf32>
    %222 = vector.broadcast %cst_81 : f32 to vector<8x32xf32>
    %223 = arith.select %220, %221, %222 : vector<8x32xi1>, vector<8x32xf32>
    %224 = math.absf %218 : vector<8x32xf32>
    %cst_82 = arith.constant 0.327591091 : f32
    %225 = vector.broadcast %cst_82 : f32 to vector<8x32xf32>
    %226 = arith.mulf %225, %224 : vector<8x32xf32>
    %cst_83 = arith.constant 1.000000e+00 : f32
    %227 = vector.broadcast %cst_83 : f32 to vector<8x32xf32>
    %228 = arith.addf %227, %226 : vector<8x32xf32>
    %cst_84 = arith.constant 1.000000e+00 : f32
    %229 = vector.broadcast %cst_84 : f32 to vector<8x32xf32>
    %230 = arith.divf %229, %228 : vector<8x32xf32>
    %cst_85 = arith.constant 1.06140542 : f32
    %231 = vector.broadcast %cst_85 : f32 to vector<8x32xf32>
    %232 = arith.mulf %231, %230 : vector<8x32xf32>
    %cst_86 = arith.constant -1.45315206 : f32
    %233 = vector.broadcast %cst_86 : f32 to vector<8x32xf32>
    %234 = arith.addf %232, %233 : vector<8x32xf32>
    %235 = arith.mulf %234, %230 : vector<8x32xf32>
    %cst_87 = arith.constant 1.42141378 : f32
    %236 = vector.broadcast %cst_87 : f32 to vector<8x32xf32>
    %237 = arith.addf %235, %236 : vector<8x32xf32>
    %238 = arith.mulf %237, %230 : vector<8x32xf32>
    %cst_88 = arith.constant -0.284496725 : f32
    %239 = vector.broadcast %cst_88 : f32 to vector<8x32xf32>
    %240 = arith.addf %238, %239 : vector<8x32xf32>
    %241 = arith.mulf %240, %230 : vector<8x32xf32>
    %cst_89 = arith.constant 0.254829586 : f32
    %242 = vector.broadcast %cst_89 : f32 to vector<8x32xf32>
    %243 = arith.addf %241, %242 : vector<8x32xf32>
    %244 = arith.mulf %243, %230 : vector<8x32xf32>
    %cst_90 = arith.constant 0.000000e+00 : f32
    %245 = vector.broadcast %cst_90 : f32 to vector<8x32xf32>
    %246 = arith.subf %245, %224 : vector<8x32xf32>
    %247 = arith.mulf %246, %224 : vector<8x32xf32>
    %248 = math.exp %247 : vector<8x32xf32>
    %249 = arith.mulf %244, %248 : vector<8x32xf32>
    %cst_91 = arith.constant 1.000000e+00 : f32
    %250 = vector.broadcast %cst_91 : f32 to vector<8x32xf32>
    %251 = arith.subf %250, %249 : vector<8x32xf32>
    %252 = arith.mulf %223, %251 : vector<8x32xf32>
    %cst_92 = arith.constant 1.000000e+00 : f32
    %253 = vector.broadcast %cst_92 : f32 to vector<8x32xf32>
    %254 = arith.addf %253, %252 : vector<8x32xf32>
    %255 = arith.mulf %216, %254 : vector<8x32xf32>
    %cst_93 = arith.constant dense<0.000000e+00> : vector<8x32xf32>
    %256 = tpu.matmul %255, %190, %cst_93 {dimension_numbers = #tpu.dot_dimension_numbers<[1], [0], [0], [1], [0, 0, 1, 1], [], []>} : vector<8x32xf32>, vector<32x32xf32>, vector<8x32xf32> -> vector<8x32xf32>
    %257 = vector.broadcast %191 : vector<1x32xf32> to vector<8x32xf32>
    %258 = arith.addf %256, %257 : vector<8x32xf32>
    %259 = vector.extract_strided_slice %179 {offsets = [2, 0, 0], sizes = [1, 32, 32], strides = [1, 1, 1]} : vector<3x32x32xf32> to vector<1x32x32xf32>
    %260 = vector.shape_cast %259 : vector<1x32x32xf32> to vector<32x32xf32>
    %cst_94 = arith.constant dense<0.000000e+00> : vector<2x32xf32>
    %261 = tpu.matmul %0, %260, %cst_94 {dimension_numbers = #tpu.dot_dimension_numbers<[1], [0], [0], [1], [0, 0, 1, 1], [], []>} : vector<2x32xf32>, vector<32x32xf32>, vector<2x32xf32> -> vector<2x32xf32>
    %262 = vector.extract_strided_slice %177 {offsets = [4, 0], sizes = [1, 32], strides = [1, 1]} : vector<7x32xf32> to vector<1x32xf32>
    %263 = vector.broadcast %262 : vector<1x32xf32> to vector<2x32xf32>
    %264 = arith.addf %261, %263 : vector<2x32xf32>
    %265 = vector.extract_strided_slice %177 {offsets = [5, 0], sizes = [1, 32], strides = [1, 1]} : vector<7x32xf32> to vector<1x32xf32>
    %266 = vector.extract_strided_slice %177 {offsets = [6, 0], sizes = [1, 32], strides = [1, 1]} : vector<7x32xf32> to vector<1x32xf32>
    %cst_95 = arith.constant dense<0.000000e+00> : vector<2xf32>
    %267 = vector.multi_reduction <add>, %264, %cst_95 [1] : vector<2x32xf32> to vector<2xf32>
    %268 = vector.shape_cast %267 : vector<2xf32> to vector<2x1xf32>
    %cst_96 = arith.constant 3.200000e+01 : f32
    %269 = vector.broadcast %cst_96 : f32 to vector<2x1xf32>
    %270 = arith.divf %268, %269 : vector<2x1xf32>
    %271 = vector.broadcast %270 : vector<2x1xf32> to vector<2x32xf32>
    %272 = arith.subf %264, %271 : vector<2x32xf32>
    %273 = arith.mulf %272, %272 : vector<2x32xf32>
    %cst_97 = arith.constant dense<0.000000e+00> : vector<2xf32>
    %274 = vector.multi_reduction <add>, %273, %cst_97 [1] : vector<2x32xf32> to vector<2xf32>
    %275 = vector.shape_cast %274 : vector<2xf32> to vector<2x1xf32>
    %cst_98 = arith.constant 3.200000e+01 : f32
    %276 = vector.broadcast %cst_98 : f32 to vector<2x1xf32>
    %277 = arith.divf %275, %276 : vector<2x1xf32>
    %cst_99 = arith.constant 9.99999974E-6 : f32
    %278 = vector.broadcast %cst_99 : f32 to vector<2x1xf32>
    %279 = arith.addf %277, %278 : vector<2x1xf32>
    %280 = math.rsqrt %279 : vector<2x1xf32>
    %281 = vector.broadcast %280 : vector<2x1xf32> to vector<2x32xf32>
    %282 = arith.mulf %272, %281 : vector<2x32xf32>
    %283 = vector.broadcast %265 : vector<1x32xf32> to vector<2x32xf32>
    %284 = arith.mulf %282, %283 : vector<2x32xf32>
    %285 = vector.broadcast %266 : vector<1x32xf32> to vector<2x32xf32>
    %286 = arith.addf %284, %285 : vector<2x32xf32>
    %cst_100 = arith.constant 5.000000e-01 : f32
    %287 = vector.broadcast %cst_100 : f32 to vector<2x32xf32>
    %288 = arith.mulf %287, %286 : vector<2x32xf32>
    %cst_101 = arith.constant 0.707106769 : f32
    %289 = vector.broadcast %cst_101 : f32 to vector<2x32xf32>
    %290 = arith.mulf %286, %289 : vector<2x32xf32>
    %cst_102 = arith.constant 0.000000e+00 : f32
    %291 = vector.broadcast %cst_102 : f32 to vector<2x32xf32>
    %292 = arith.cmpf oge, %290, %291 : vector<2x32xf32>
    %cst_103 = arith.constant 1.000000e+00 : f32
    %cst_104 = arith.constant -1.000000e+00 : f32
    %293 = vector.broadcast %cst_103 : f32 to vector<2x32xf32>
    %294 = vector.broadcast %cst_104 : f32 to vector<2x32xf32>
    %295 = arith.select %292, %293, %294 : vector<2x32xi1>, vector<2x32xf32>
    %296 = math.absf %290 : vector<2x32xf32>
    %cst_105 = arith.constant 0.327591091 : f32
    %297 = vector.broadcast %cst_105 : f32 to vector<2x32xf32>
    %298 = arith.mulf %297, %296 : vector<2x32xf32>
    %cst_106 = arith.constant 1.000000e+00 : f32
    %299 = vector.broadcast %cst_106 : f32 to vector<2x32xf32>
    %300 = arith.addf %299, %298 : vector<2x32xf32>
    %cst_107 = arith.constant 1.000000e+00 : f32
    %301 = vector.broadcast %cst_107 : f32 to vector<2x32xf32>
    %302 = arith.divf %301, %300 : vector<2x32xf32>
    %cst_108 = arith.constant 1.06140542 : f32
    %303 = vector.broadcast %cst_108 : f32 to vector<2x32xf32>
    %304 = arith.mulf %303, %302 : vector<2x32xf32>
    %cst_109 = arith.constant -1.45315206 : f32
    %305 = vector.broadcast %cst_109 : f32 to vector<2x32xf32>
    %306 = arith.addf %304, %305 : vector<2x32xf32>
    %307 = arith.mulf %306, %302 : vector<2x32xf32>
    %cst_110 = arith.constant 1.42141378 : f32
    %308 = vector.broadcast %cst_110 : f32 to vector<2x32xf32>
    %309 = arith.addf %307, %308 : vector<2x32xf32>
    %310 = arith.mulf %309, %302 : vector<2x32xf32>
    %cst_111 = arith.constant -0.284496725 : f32
    %311 = vector.broadcast %cst_111 : f32 to vector<2x32xf32>
    %312 = arith.addf %310, %311 : vector<2x32xf32>
    %313 = arith.mulf %312, %302 : vector<2x32xf32>
    %cst_112 = arith.constant 0.254829586 : f32
    %314 = vector.broadcast %cst_112 : f32 to vector<2x32xf32>
    %315 = arith.addf %313, %314 : vector<2x32xf32>
    %316 = arith.mulf %315, %302 : vector<2x32xf32>
    %cst_113 = arith.constant 0.000000e+00 : f32
    %317 = vector.broadcast %cst_113 : f32 to vector<2x32xf32>
    %318 = arith.subf %317, %296 : vector<2x32xf32>
    %319 = arith.mulf %318, %296 : vector<2x32xf32>
    %320 = math.exp %319 : vector<2x32xf32>
    %321 = arith.mulf %316, %320 : vector<2x32xf32>
    %cst_114 = arith.constant 1.000000e+00 : f32
    %322 = vector.broadcast %cst_114 : f32 to vector<2x32xf32>
    %323 = arith.subf %322, %321 : vector<2x32xf32>
    %324 = arith.mulf %295, %323 : vector<2x32xf32>
    %cst_115 = arith.constant 1.000000e+00 : f32
    %325 = vector.broadcast %cst_115 : f32 to vector<2x32xf32>
    %326 = arith.addf %325, %324 : vector<2x32xf32>
    %327 = arith.mulf %288, %326 : vector<2x32xf32>
    %328 = vector.extract_strided_slice %181 {offsets = [1, 0, 0], sizes = [1, 8, 32], strides = [1, 1, 1]} : vector<3x8x32xf32> to vector<1x8x32xf32>
    %329 = vector.shape_cast %328 : vector<1x8x32xf32> to vector<8x32xf32>
    %cst_116 = arith.constant dense<0.000000e+00> : vector<8x2xf32>
    %330 = tpu.matmul %329, %327, %cst_116 {dimension_numbers = #tpu.dot_dimension_numbers<[1], [1], [0], [0], [0, 0, 1, 0], [], []>} : vector<8x32xf32>, vector<2x32xf32>, vector<8x2xf32> -> vector<8x2xf32>
    %331 = vector.extract_strided_slice %181 {offsets = [2, 0, 0], sizes = [1, 8, 1], strides = [1, 1, 1]} : vector<3x8x32xf32> to vector<1x8x1xf32>
    %332 = vector.shape_cast %331 : vector<1x8x1xf32> to vector<8x1xf32>
    %333 = vector.broadcast %332 : vector<8x1xf32> to vector<8x2xf32>
    %334 = arith.addf %330, %333 : vector<8x2xf32>
    %cst_117 = arith.constant dense<0xFF800000> : vector<2xf32>
    %335 = vector.multi_reduction <maximumf>, %334, %cst_117 [0] : vector<8x2xf32> to vector<2xf32>
    %336 = vector.shape_cast %335 : vector<2xf32> to vector<1x2xf32>
    %337 = vector.broadcast %336 : vector<1x2xf32> to vector<8x2xf32>
    %338 = arith.subf %334, %337 : vector<8x2xf32>
    %339 = math.exp %338 : vector<8x2xf32>
    %cst_118 = arith.constant dense<0.000000e+00> : vector<2xf32>
    %340 = vector.multi_reduction <add>, %339, %cst_118 [0] : vector<8x2xf32> to vector<2xf32>
    %341 = vector.shape_cast %340 : vector<2xf32> to vector<1x2xf32>
    %342 = tpu.reciprocal %341 {approx = true} : vector<1x2xf32> -> vector<1x2xf32>
    %343 = vector.broadcast %342 : vector<1x2xf32> to vector<8x2xf32>
    %344 = arith.mulf %339, %343 : vector<8x2xf32>
    %cst_119 = arith.constant dense<0.000000e+00> : vector<8xf32>
    %345 = vector.multi_reduction <add>, %344, %cst_119 [1] : vector<8x2xf32> to vector<8xf32>
    %346 = vector.shape_cast %345 : vector<8xf32> to vector<8x1xf32>
    %cst_120 = arith.constant 2.000000e+00 : f32
    %347 = vector.broadcast %cst_120 : f32 to vector<8x1xf32>
    %348 = arith.divf %346, %347 : vector<8x1xf32>
    %349 = vector.broadcast %348 : vector<8x1xf32> to vector<8x32xf32>
    %350 = arith.mulf %258, %349 : vector<8x32xf32>
    %c2 = arith.constant 2 : index
    %c0_121 = arith.constant 0 : index
    %c0_122 = arith.constant 0 : index
    %351 = vector.load %arg2[%c2, %c0_121, %c0_122] : memref<4x7x32xf32, #tpu.memory_space<vmem>>, vector<1x7x32xf32>
    %352 = vector.shape_cast %351 : vector<1x7x32xf32> to vector<7x32xf32>
    %c2_123 = arith.constant 2 : index
    %c0_124 = arith.constant 0 : index
    %c0_125 = arith.constant 0 : index
    %c0_126 = arith.constant 0 : index
    %353 = vector.load %arg1[%c2_123, %c0_124, %c0_125, %c0_126] : memref<4x3x32x32xf32, #tpu.memory_space<vmem>>, vector<1x3x32x32xf32>
    %354 = vector.shape_cast %353 : vector<1x3x32x32xf32> to vector<3x32x32xf32>
    %c2_127 = arith.constant 2 : index
    %c0_128 = arith.constant 0 : index
    %c0_129 = arith.constant 0 : index
    %c0_130 = arith.constant 0 : index
    %355 = vector.load %arg0[%c2_127, %c0_128, %c0_129, %c0_130] : memref<4x3x8x32xf32, #tpu.memory_space<vmem>>, vector<1x3x8x32xf32>
    %356 = vector.shape_cast %355 : vector<1x3x8x32xf32> to vector<3x8x32xf32>
    %357 = vector.extract_strided_slice %356 {offsets = [0, 0, 0], sizes = [1, 8, 32], strides = [1, 1, 1]} : vector<3x8x32xf32> to vector<1x8x32xf32>
    %358 = vector.shape_cast %357 : vector<1x8x32xf32> to vector<8x32xf32>
    %359 = vector.extract_strided_slice %354 {offsets = [0, 0, 0], sizes = [1, 32, 32], strides = [1, 1, 1]} : vector<3x32x32xf32> to vector<1x32x32xf32>
    %360 = vector.shape_cast %359 : vector<1x32x32xf32> to vector<32x32xf32>
    %361 = vector.extract_strided_slice %352 {offsets = [0, 0], sizes = [1, 32], strides = [1, 1]} : vector<7x32xf32> to vector<1x32xf32>
    %362 = vector.extract_strided_slice %352 {offsets = [1, 0], sizes = [1, 32], strides = [1, 1]} : vector<7x32xf32> to vector<1x32xf32>
    %363 = vector.extract_strided_slice %352 {offsets = [2, 0], sizes = [1, 32], strides = [1, 1]} : vector<7x32xf32> to vector<1x32xf32>
    %364 = vector.extract_strided_slice %354 {offsets = [1, 0, 0], sizes = [1, 32, 32], strides = [1, 1, 1]} : vector<3x32x32xf32> to vector<1x32x32xf32>
    %365 = vector.shape_cast %364 : vector<1x32x32xf32> to vector<32x32xf32>
    %366 = vector.extract_strided_slice %352 {offsets = [3, 0], sizes = [1, 32], strides = [1, 1]} : vector<7x32xf32> to vector<1x32xf32>
    %cst_131 = arith.constant dense<0.000000e+00> : vector<8x32xf32>
    %367 = tpu.matmul %358, %360, %cst_131 {dimension_numbers = #tpu.dot_dimension_numbers<[1], [0], [0], [1], [0, 0, 1, 1], [], []>} : vector<8x32xf32>, vector<32x32xf32>, vector<8x32xf32> -> vector<8x32xf32>
    %368 = vector.broadcast %361 : vector<1x32xf32> to vector<8x32xf32>
    %369 = arith.addf %367, %368 : vector<8x32xf32>
    %cst_132 = arith.constant dense<0.000000e+00> : vector<8xf32>
    %370 = vector.multi_reduction <add>, %369, %cst_132 [1] : vector<8x32xf32> to vector<8xf32>
    %371 = vector.shape_cast %370 : vector<8xf32> to vector<8x1xf32>
    %cst_133 = arith.constant 3.200000e+01 : f32
    %372 = vector.broadcast %cst_133 : f32 to vector<8x1xf32>
    %373 = arith.divf %371, %372 : vector<8x1xf32>
    %374 = vector.broadcast %373 : vector<8x1xf32> to vector<8x32xf32>
    %375 = arith.subf %369, %374 : vector<8x32xf32>
    %376 = arith.mulf %375, %375 : vector<8x32xf32>
    %cst_134 = arith.constant dense<0.000000e+00> : vector<8xf32>
    %377 = vector.multi_reduction <add>, %376, %cst_134 [1] : vector<8x32xf32> to vector<8xf32>
    %378 = vector.shape_cast %377 : vector<8xf32> to vector<8x1xf32>
    %cst_135 = arith.constant 3.200000e+01 : f32
    %379 = vector.broadcast %cst_135 : f32 to vector<8x1xf32>
    %380 = arith.divf %378, %379 : vector<8x1xf32>
    %cst_136 = arith.constant 9.99999974E-6 : f32
    %381 = vector.broadcast %cst_136 : f32 to vector<8x1xf32>
    %382 = arith.addf %380, %381 : vector<8x1xf32>
    %383 = math.rsqrt %382 : vector<8x1xf32>
    %384 = vector.broadcast %383 : vector<8x1xf32> to vector<8x32xf32>
    %385 = arith.mulf %375, %384 : vector<8x32xf32>
    %386 = vector.broadcast %362 : vector<1x32xf32> to vector<8x32xf32>
    %387 = arith.mulf %385, %386 : vector<8x32xf32>
    %388 = vector.broadcast %363 : vector<1x32xf32> to vector<8x32xf32>
    %389 = arith.addf %387, %388 : vector<8x32xf32>
    %cst_137 = arith.constant 5.000000e-01 : f32
    %390 = vector.broadcast %cst_137 : f32 to vector<8x32xf32>
    %391 = arith.mulf %390, %389 : vector<8x32xf32>
    %cst_138 = arith.constant 0.707106769 : f32
    %392 = vector.broadcast %cst_138 : f32 to vector<8x32xf32>
    %393 = arith.mulf %389, %392 : vector<8x32xf32>
    %cst_139 = arith.constant 0.000000e+00 : f32
    %394 = vector.broadcast %cst_139 : f32 to vector<8x32xf32>
    %395 = arith.cmpf oge, %393, %394 : vector<8x32xf32>
    %cst_140 = arith.constant 1.000000e+00 : f32
    %cst_141 = arith.constant -1.000000e+00 : f32
    %396 = vector.broadcast %cst_140 : f32 to vector<8x32xf32>
    %397 = vector.broadcast %cst_141 : f32 to vector<8x32xf32>
    %398 = arith.select %395, %396, %397 : vector<8x32xi1>, vector<8x32xf32>
    %399 = math.absf %393 : vector<8x32xf32>
    %cst_142 = arith.constant 0.327591091 : f32
    %400 = vector.broadcast %cst_142 : f32 to vector<8x32xf32>
    %401 = arith.mulf %400, %399 : vector<8x32xf32>
    %cst_143 = arith.constant 1.000000e+00 : f32
    %402 = vector.broadcast %cst_143 : f32 to vector<8x32xf32>
    %403 = arith.addf %402, %401 : vector<8x32xf32>
    %cst_144 = arith.constant 1.000000e+00 : f32
    %404 = vector.broadcast %cst_144 : f32 to vector<8x32xf32>
    %405 = arith.divf %404, %403 : vector<8x32xf32>
    %cst_145 = arith.constant 1.06140542 : f32
    %406 = vector.broadcast %cst_145 : f32 to vector<8x32xf32>
    %407 = arith.mulf %406, %405 : vector<8x32xf32>
    %cst_146 = arith.constant -1.45315206 : f32
    %408 = vector.broadcast %cst_146 : f32 to vector<8x32xf32>
    %409 = arith.addf %407, %408 : vector<8x32xf32>
    %410 = arith.mulf %409, %405 : vector<8x32xf32>
    %cst_147 = arith.constant 1.42141378 : f32
    %411 = vector.broadcast %cst_147 : f32 to vector<8x32xf32>
    %412 = arith.addf %410, %411 : vector<8x32xf32>
    %413 = arith.mulf %412, %405 : vector<8x32xf32>
    %cst_148 = arith.constant -0.284496725 : f32
    %414 = vector.broadcast %cst_148 : f32 to vector<8x32xf32>
    %415 = arith.addf %413, %414 : vector<8x32xf32>
    %416 = arith.mulf %415, %405 : vector<8x32xf32>
    %cst_149 = arith.constant 0.254829586 : f32
    %417 = vector.broadcast %cst_149 : f32 to vector<8x32xf32>
    %418 = arith.addf %416, %417 : vector<8x32xf32>
    %419 = arith.mulf %418, %405 : vector<8x32xf32>
    %cst_150 = arith.constant 0.000000e+00 : f32
    %420 = vector.broadcast %cst_150 : f32 to vector<8x32xf32>
    %421 = arith.subf %420, %399 : vector<8x32xf32>
    %422 = arith.mulf %421, %399 : vector<8x32xf32>
    %423 = math.exp %422 : vector<8x32xf32>
    %424 = arith.mulf %419, %423 : vector<8x32xf32>
    %cst_151 = arith.constant 1.000000e+00 : f32
    %425 = vector.broadcast %cst_151 : f32 to vector<8x32xf32>
    %426 = arith.subf %425, %424 : vector<8x32xf32>
    %427 = arith.mulf %398, %426 : vector<8x32xf32>
    %cst_152 = arith.constant 1.000000e+00 : f32
    %428 = vector.broadcast %cst_152 : f32 to vector<8x32xf32>
    %429 = arith.addf %428, %427 : vector<8x32xf32>
    %430 = arith.mulf %391, %429 : vector<8x32xf32>
    %cst_153 = arith.constant dense<0.000000e+00> : vector<8x32xf32>
    %431 = tpu.matmul %430, %365, %cst_153 {dimension_numbers = #tpu.dot_dimension_numbers<[1], [0], [0], [1], [0, 0, 1, 1], [], []>} : vector<8x32xf32>, vector<32x32xf32>, vector<8x32xf32> -> vector<8x32xf32>
    %432 = vector.broadcast %366 : vector<1x32xf32> to vector<8x32xf32>
    %433 = arith.addf %431, %432 : vector<8x32xf32>
    %434 = vector.extract_strided_slice %354 {offsets = [2, 0, 0], sizes = [1, 32, 32], strides = [1, 1, 1]} : vector<3x32x32xf32> to vector<1x32x32xf32>
    %435 = vector.shape_cast %434 : vector<1x32x32xf32> to vector<32x32xf32>
    %cst_154 = arith.constant dense<0.000000e+00> : vector<2x32xf32>
    %436 = tpu.matmul %0, %435, %cst_154 {dimension_numbers = #tpu.dot_dimension_numbers<[1], [0], [0], [1], [0, 0, 1, 1], [], []>} : vector<2x32xf32>, vector<32x32xf32>, vector<2x32xf32> -> vector<2x32xf32>
    %437 = vector.extract_strided_slice %352 {offsets = [4, 0], sizes = [1, 32], strides = [1, 1]} : vector<7x32xf32> to vector<1x32xf32>
    %438 = vector.broadcast %437 : vector<1x32xf32> to vector<2x32xf32>
    %439 = arith.addf %436, %438 : vector<2x32xf32>
    %440 = vector.extract_strided_slice %352 {offsets = [5, 0], sizes = [1, 32], strides = [1, 1]} : vector<7x32xf32> to vector<1x32xf32>
    %441 = vector.extract_strided_slice %352 {offsets = [6, 0], sizes = [1, 32], strides = [1, 1]} : vector<7x32xf32> to vector<1x32xf32>
    %cst_155 = arith.constant dense<0.000000e+00> : vector<2xf32>
    %442 = vector.multi_reduction <add>, %439, %cst_155 [1] : vector<2x32xf32> to vector<2xf32>
    %443 = vector.shape_cast %442 : vector<2xf32> to vector<2x1xf32>
    %cst_156 = arith.constant 3.200000e+01 : f32
    %444 = vector.broadcast %cst_156 : f32 to vector<2x1xf32>
    %445 = arith.divf %443, %444 : vector<2x1xf32>
    %446 = vector.broadcast %445 : vector<2x1xf32> to vector<2x32xf32>
    %447 = arith.subf %439, %446 : vector<2x32xf32>
    %448 = arith.mulf %447, %447 : vector<2x32xf32>
    %cst_157 = arith.constant dense<0.000000e+00> : vector<2xf32>
    %449 = vector.multi_reduction <add>, %448, %cst_157 [1] : vector<2x32xf32> to vector<2xf32>
    %450 = vector.shape_cast %449 : vector<2xf32> to vector<2x1xf32>
    %cst_158 = arith.constant 3.200000e+01 : f32
    %451 = vector.broadcast %cst_158 : f32 to vector<2x1xf32>
    %452 = arith.divf %450, %451 : vector<2x1xf32>
    %cst_159 = arith.constant 9.99999974E-6 : f32
    %453 = vector.broadcast %cst_159 : f32 to vector<2x1xf32>
    %454 = arith.addf %452, %453 : vector<2x1xf32>
    %455 = math.rsqrt %454 : vector<2x1xf32>
    %456 = vector.broadcast %455 : vector<2x1xf32> to vector<2x32xf32>
    %457 = arith.mulf %447, %456 : vector<2x32xf32>
    %458 = vector.broadcast %440 : vector<1x32xf32> to vector<2x32xf32>
    %459 = arith.mulf %457, %458 : vector<2x32xf32>
    %460 = vector.broadcast %441 : vector<1x32xf32> to vector<2x32xf32>
    %461 = arith.addf %459, %460 : vector<2x32xf32>
    %cst_160 = arith.constant 5.000000e-01 : f32
    %462 = vector.broadcast %cst_160 : f32 to vector<2x32xf32>
    %463 = arith.mulf %462, %461 : vector<2x32xf32>
    %cst_161 = arith.constant 0.707106769 : f32
    %464 = vector.broadcast %cst_161 : f32 to vector<2x32xf32>
    %465 = arith.mulf %461, %464 : vector<2x32xf32>
    %cst_162 = arith.constant 0.000000e+00 : f32
    %466 = vector.broadcast %cst_162 : f32 to vector<2x32xf32>
    %467 = arith.cmpf oge, %465, %466 : vector<2x32xf32>
    %cst_163 = arith.constant 1.000000e+00 : f32
    %cst_164 = arith.constant -1.000000e+00 : f32
    %468 = vector.broadcast %cst_163 : f32 to vector<2x32xf32>
    %469 = vector.broadcast %cst_164 : f32 to vector<2x32xf32>
    %470 = arith.select %467, %468, %469 : vector<2x32xi1>, vector<2x32xf32>
    %471 = math.absf %465 : vector<2x32xf32>
    %cst_165 = arith.constant 0.327591091 : f32
    %472 = vector.broadcast %cst_165 : f32 to vector<2x32xf32>
    %473 = arith.mulf %472, %471 : vector<2x32xf32>
    %cst_166 = arith.constant 1.000000e+00 : f32
    %474 = vector.broadcast %cst_166 : f32 to vector<2x32xf32>
    %475 = arith.addf %474, %473 : vector<2x32xf32>
    %cst_167 = arith.constant 1.000000e+00 : f32
    %476 = vector.broadcast %cst_167 : f32 to vector<2x32xf32>
    %477 = arith.divf %476, %475 : vector<2x32xf32>
    %cst_168 = arith.constant 1.06140542 : f32
    %478 = vector.broadcast %cst_168 : f32 to vector<2x32xf32>
    %479 = arith.mulf %478, %477 : vector<2x32xf32>
    %cst_169 = arith.constant -1.45315206 : f32
    %480 = vector.broadcast %cst_169 : f32 to vector<2x32xf32>
    %481 = arith.addf %479, %480 : vector<2x32xf32>
    %482 = arith.mulf %481, %477 : vector<2x32xf32>
    %cst_170 = arith.constant 1.42141378 : f32
    %483 = vector.broadcast %cst_170 : f32 to vector<2x32xf32>
    %484 = arith.addf %482, %483 : vector<2x32xf32>
    %485 = arith.mulf %484, %477 : vector<2x32xf32>
    %cst_171 = arith.constant -0.284496725 : f32
    %486 = vector.broadcast %cst_171 : f32 to vector<2x32xf32>
    %487 = arith.addf %485, %486 : vector<2x32xf32>
    %488 = arith.mulf %487, %477 : vector<2x32xf32>
    %cst_172 = arith.constant 0.254829586 : f32
    %489 = vector.broadcast %cst_172 : f32 to vector<2x32xf32>
    %490 = arith.addf %488, %489 : vector<2x32xf32>
    %491 = arith.mulf %490, %477 : vector<2x32xf32>
    %cst_173 = arith.constant 0.000000e+00 : f32
    %492 = vector.broadcast %cst_173 : f32 to vector<2x32xf32>
    %493 = arith.subf %492, %471 : vector<2x32xf32>
    %494 = arith.mulf %493, %471 : vector<2x32xf32>
    %495 = math.exp %494 : vector<2x32xf32>
    %496 = arith.mulf %491, %495 : vector<2x32xf32>
    %cst_174 = arith.constant 1.000000e+00 : f32
    %497 = vector.broadcast %cst_174 : f32 to vector<2x32xf32>
    %498 = arith.subf %497, %496 : vector<2x32xf32>
    %499 = arith.mulf %470, %498 : vector<2x32xf32>
    %cst_175 = arith.constant 1.000000e+00 : f32
    %500 = vector.broadcast %cst_175 : f32 to vector<2x32xf32>
    %501 = arith.addf %500, %499 : vector<2x32xf32>
    %502 = arith.mulf %463, %501 : vector<2x32xf32>
    %503 = vector.extract_strided_slice %356 {offsets = [1, 0, 0], sizes = [1, 8, 32], strides = [1, 1, 1]} : vector<3x8x32xf32> to vector<1x8x32xf32>
    %504 = vector.shape_cast %503 : vector<1x8x32xf32> to vector<8x32xf32>
    %cst_176 = arith.constant dense<0.000000e+00> : vector<8x2xf32>
    %505 = tpu.matmul %504, %502, %cst_176 {dimension_numbers = #tpu.dot_dimension_numbers<[1], [1], [0], [0], [0, 0, 1, 0], [], []>} : vector<8x32xf32>, vector<2x32xf32>, vector<8x2xf32> -> vector<8x2xf32>
    %506 = vector.extract_strided_slice %356 {offsets = [2, 0, 0], sizes = [1, 8, 1], strides = [1, 1, 1]} : vector<3x8x32xf32> to vector<1x8x1xf32>
    %507 = vector.shape_cast %506 : vector<1x8x1xf32> to vector<8x1xf32>
    %508 = vector.broadcast %507 : vector<8x1xf32> to vector<8x2xf32>
    %509 = arith.addf %505, %508 : vector<8x2xf32>
    %cst_177 = arith.constant dense<0xFF800000> : vector<2xf32>
    %510 = vector.multi_reduction <maximumf>, %509, %cst_177 [0] : vector<8x2xf32> to vector<2xf32>
    %511 = vector.shape_cast %510 : vector<2xf32> to vector<1x2xf32>
    %512 = vector.broadcast %511 : vector<1x2xf32> to vector<8x2xf32>
    %513 = arith.subf %509, %512 : vector<8x2xf32>
    %514 = math.exp %513 : vector<8x2xf32>
    %cst_178 = arith.constant dense<0.000000e+00> : vector<2xf32>
    %515 = vector.multi_reduction <add>, %514, %cst_178 [0] : vector<8x2xf32> to vector<2xf32>
    %516 = vector.shape_cast %515 : vector<2xf32> to vector<1x2xf32>
    %517 = tpu.reciprocal %516 {approx = true} : vector<1x2xf32> -> vector<1x2xf32>
    %518 = vector.broadcast %517 : vector<1x2xf32> to vector<8x2xf32>
    %519 = arith.mulf %514, %518 : vector<8x2xf32>
    %cst_179 = arith.constant dense<0.000000e+00> : vector<8xf32>
    %520 = vector.multi_reduction <add>, %519, %cst_179 [1] : vector<8x2xf32> to vector<8xf32>
    %521 = vector.shape_cast %520 : vector<8xf32> to vector<8x1xf32>
    %cst_180 = arith.constant 2.000000e+00 : f32
    %522 = vector.broadcast %cst_180 : f32 to vector<8x1xf32>
    %523 = arith.divf %521, %522 : vector<8x1xf32>
    %524 = vector.broadcast %523 : vector<8x1xf32> to vector<8x32xf32>
    %525 = arith.mulf %433, %524 : vector<8x32xf32>
    %c3 = arith.constant 3 : index
    %c0_181 = arith.constant 0 : index
    %c0_182 = arith.constant 0 : index
    %526 = vector.load %arg2[%c3, %c0_181, %c0_182] : memref<4x7x32xf32, #tpu.memory_space<vmem>>, vector<1x7x32xf32>
    %527 = vector.shape_cast %526 : vector<1x7x32xf32> to vector<7x32xf32>
    %c3_183 = arith.constant 3 : index
    %c0_184 = arith.constant 0 : index
    %c0_185 = arith.constant 0 : index
    %c0_186 = arith.constant 0 : index
    %528 = vector.load %arg1[%c3_183, %c0_184, %c0_185, %c0_186] : memref<4x3x32x32xf32, #tpu.memory_space<vmem>>, vector<1x3x32x32xf32>
    %529 = vector.shape_cast %528 : vector<1x3x32x32xf32> to vector<3x32x32xf32>
    %c3_187 = arith.constant 3 : index
    %c0_188 = arith.constant 0 : index
    %c0_189 = arith.constant 0 : index
    %c0_190 = arith.constant 0 : index
    %530 = vector.load %arg0[%c3_187, %c0_188, %c0_189, %c0_190] : memref<4x3x8x32xf32, #tpu.memory_space<vmem>>, vector<1x3x8x32xf32>
    %531 = vector.shape_cast %530 : vector<1x3x8x32xf32> to vector<3x8x32xf32>
    %532 = vector.extract_strided_slice %531 {offsets = [0, 0, 0], sizes = [1, 8, 32], strides = [1, 1, 1]} : vector<3x8x32xf32> to vector<1x8x32xf32>
    %533 = vector.shape_cast %532 : vector<1x8x32xf32> to vector<8x32xf32>
    %534 = vector.extract_strided_slice %529 {offsets = [0, 0, 0], sizes = [1, 32, 32], strides = [1, 1, 1]} : vector<3x32x32xf32> to vector<1x32x32xf32>
    %535 = vector.shape_cast %534 : vector<1x32x32xf32> to vector<32x32xf32>
    %536 = vector.extract_strided_slice %527 {offsets = [0, 0], sizes = [1, 32], strides = [1, 1]} : vector<7x32xf32> to vector<1x32xf32>
    %537 = vector.extract_strided_slice %527 {offsets = [1, 0], sizes = [1, 32], strides = [1, 1]} : vector<7x32xf32> to vector<1x32xf32>
    %538 = vector.extract_strided_slice %527 {offsets = [2, 0], sizes = [1, 32], strides = [1, 1]} : vector<7x32xf32> to vector<1x32xf32>
    %539 = vector.extract_strided_slice %529 {offsets = [1, 0, 0], sizes = [1, 32, 32], strides = [1, 1, 1]} : vector<3x32x32xf32> to vector<1x32x32xf32>
    %540 = vector.shape_cast %539 : vector<1x32x32xf32> to vector<32x32xf32>
    %541 = vector.extract_strided_slice %527 {offsets = [3, 0], sizes = [1, 32], strides = [1, 1]} : vector<7x32xf32> to vector<1x32xf32>
    %cst_191 = arith.constant dense<0.000000e+00> : vector<8x32xf32>
    %542 = tpu.matmul %533, %535, %cst_191 {dimension_numbers = #tpu.dot_dimension_numbers<[1], [0], [0], [1], [0, 0, 1, 1], [], []>} : vector<8x32xf32>, vector<32x32xf32>, vector<8x32xf32> -> vector<8x32xf32>
    %543 = vector.broadcast %536 : vector<1x32xf32> to vector<8x32xf32>
    %544 = arith.addf %542, %543 : vector<8x32xf32>
    %cst_192 = arith.constant dense<0.000000e+00> : vector<8xf32>
    %545 = vector.multi_reduction <add>, %544, %cst_192 [1] : vector<8x32xf32> to vector<8xf32>
    %546 = vector.shape_cast %545 : vector<8xf32> to vector<8x1xf32>
    %cst_193 = arith.constant 3.200000e+01 : f32
    %547 = vector.broadcast %cst_193 : f32 to vector<8x1xf32>
    %548 = arith.divf %546, %547 : vector<8x1xf32>
    %549 = vector.broadcast %548 : vector<8x1xf32> to vector<8x32xf32>
    %550 = arith.subf %544, %549 : vector<8x32xf32>
    %551 = arith.mulf %550, %550 : vector<8x32xf32>
    %cst_194 = arith.constant dense<0.000000e+00> : vector<8xf32>
    %552 = vector.multi_reduction <add>, %551, %cst_194 [1] : vector<8x32xf32> to vector<8xf32>
    %553 = vector.shape_cast %552 : vector<8xf32> to vector<8x1xf32>
    %cst_195 = arith.constant 3.200000e+01 : f32
    %554 = vector.broadcast %cst_195 : f32 to vector<8x1xf32>
    %555 = arith.divf %553, %554 : vector<8x1xf32>
    %cst_196 = arith.constant 9.99999974E-6 : f32
    %556 = vector.broadcast %cst_196 : f32 to vector<8x1xf32>
    %557 = arith.addf %555, %556 : vector<8x1xf32>
    %558 = math.rsqrt %557 : vector<8x1xf32>
    %559 = vector.broadcast %558 : vector<8x1xf32> to vector<8x32xf32>
    %560 = arith.mulf %550, %559 : vector<8x32xf32>
    %561 = vector.broadcast %537 : vector<1x32xf32> to vector<8x32xf32>
    %562 = arith.mulf %560, %561 : vector<8x32xf32>
    %563 = vector.broadcast %538 : vector<1x32xf32> to vector<8x32xf32>
    %564 = arith.addf %562, %563 : vector<8x32xf32>
    %cst_197 = arith.constant 5.000000e-01 : f32
    %565 = vector.broadcast %cst_197 : f32 to vector<8x32xf32>
    %566 = arith.mulf %565, %564 : vector<8x32xf32>
    %cst_198 = arith.constant 0.707106769 : f32
    %567 = vector.broadcast %cst_198 : f32 to vector<8x32xf32>
    %568 = arith.mulf %564, %567 : vector<8x32xf32>
    %cst_199 = arith.constant 0.000000e+00 : f32
    %569 = vector.broadcast %cst_199 : f32 to vector<8x32xf32>
    %570 = arith.cmpf oge, %568, %569 : vector<8x32xf32>
    %cst_200 = arith.constant 1.000000e+00 : f32
    %cst_201 = arith.constant -1.000000e+00 : f32
    %571 = vector.broadcast %cst_200 : f32 to vector<8x32xf32>
    %572 = vector.broadcast %cst_201 : f32 to vector<8x32xf32>
    %573 = arith.select %570, %571, %572 : vector<8x32xi1>, vector<8x32xf32>
    %574 = math.absf %568 : vector<8x32xf32>
    %cst_202 = arith.constant 0.327591091 : f32
    %575 = vector.broadcast %cst_202 : f32 to vector<8x32xf32>
    %576 = arith.mulf %575, %574 : vector<8x32xf32>
    %cst_203 = arith.constant 1.000000e+00 : f32
    %577 = vector.broadcast %cst_203 : f32 to vector<8x32xf32>
    %578 = arith.addf %577, %576 : vector<8x32xf32>
    %cst_204 = arith.constant 1.000000e+00 : f32
    %579 = vector.broadcast %cst_204 : f32 to vector<8x32xf32>
    %580 = arith.divf %579, %578 : vector<8x32xf32>
    %cst_205 = arith.constant 1.06140542 : f32
    %581 = vector.broadcast %cst_205 : f32 to vector<8x32xf32>
    %582 = arith.mulf %581, %580 : vector<8x32xf32>
    %cst_206 = arith.constant -1.45315206 : f32
    %583 = vector.broadcast %cst_206 : f32 to vector<8x32xf32>
    %584 = arith.addf %582, %583 : vector<8x32xf32>
    %585 = arith.mulf %584, %580 : vector<8x32xf32>
    %cst_207 = arith.constant 1.42141378 : f32
    %586 = vector.broadcast %cst_207 : f32 to vector<8x32xf32>
    %587 = arith.addf %585, %586 : vector<8x32xf32>
    %588 = arith.mulf %587, %580 : vector<8x32xf32>
    %cst_208 = arith.constant -0.284496725 : f32
    %589 = vector.broadcast %cst_208 : f32 to vector<8x32xf32>
    %590 = arith.addf %588, %589 : vector<8x32xf32>
    %591 = arith.mulf %590, %580 : vector<8x32xf32>
    %cst_209 = arith.constant 0.254829586 : f32
    %592 = vector.broadcast %cst_209 : f32 to vector<8x32xf32>
    %593 = arith.addf %591, %592 : vector<8x32xf32>
    %594 = arith.mulf %593, %580 : vector<8x32xf32>
    %cst_210 = arith.constant 0.000000e+00 : f32
    %595 = vector.broadcast %cst_210 : f32 to vector<8x32xf32>
    %596 = arith.subf %595, %574 : vector<8x32xf32>
    %597 = arith.mulf %596, %574 : vector<8x32xf32>
    %598 = math.exp %597 : vector<8x32xf32>
    %599 = arith.mulf %594, %598 : vector<8x32xf32>
    %cst_211 = arith.constant 1.000000e+00 : f32
    %600 = vector.broadcast %cst_211 : f32 to vector<8x32xf32>
    %601 = arith.subf %600, %599 : vector<8x32xf32>
    %602 = arith.mulf %573, %601 : vector<8x32xf32>
    %cst_212 = arith.constant 1.000000e+00 : f32
    %603 = vector.broadcast %cst_212 : f32 to vector<8x32xf32>
    %604 = arith.addf %603, %602 : vector<8x32xf32>
    %605 = arith.mulf %566, %604 : vector<8x32xf32>
    %cst_213 = arith.constant dense<0.000000e+00> : vector<8x32xf32>
    %606 = tpu.matmul %605, %540, %cst_213 {dimension_numbers = #tpu.dot_dimension_numbers<[1], [0], [0], [1], [0, 0, 1, 1], [], []>} : vector<8x32xf32>, vector<32x32xf32>, vector<8x32xf32> -> vector<8x32xf32>
    %607 = vector.broadcast %541 : vector<1x32xf32> to vector<8x32xf32>
    %608 = arith.addf %606, %607 : vector<8x32xf32>
    %609 = vector.extract_strided_slice %529 {offsets = [2, 0, 0], sizes = [1, 32, 32], strides = [1, 1, 1]} : vector<3x32x32xf32> to vector<1x32x32xf32>
    %610 = vector.shape_cast %609 : vector<1x32x32xf32> to vector<32x32xf32>
    %cst_214 = arith.constant dense<0.000000e+00> : vector<2x32xf32>
    %611 = tpu.matmul %0, %610, %cst_214 {dimension_numbers = #tpu.dot_dimension_numbers<[1], [0], [0], [1], [0, 0, 1, 1], [], []>} : vector<2x32xf32>, vector<32x32xf32>, vector<2x32xf32> -> vector<2x32xf32>
    %612 = vector.extract_strided_slice %527 {offsets = [4, 0], sizes = [1, 32], strides = [1, 1]} : vector<7x32xf32> to vector<1x32xf32>
    %613 = vector.broadcast %612 : vector<1x32xf32> to vector<2x32xf32>
    %614 = arith.addf %611, %613 : vector<2x32xf32>
    %615 = vector.extract_strided_slice %527 {offsets = [5, 0], sizes = [1, 32], strides = [1, 1]} : vector<7x32xf32> to vector<1x32xf32>
    %616 = vector.extract_strided_slice %527 {offsets = [6, 0], sizes = [1, 32], strides = [1, 1]} : vector<7x32xf32> to vector<1x32xf32>
    %cst_215 = arith.constant dense<0.000000e+00> : vector<2xf32>
    %617 = vector.multi_reduction <add>, %614, %cst_215 [1] : vector<2x32xf32> to vector<2xf32>
    %618 = vector.shape_cast %617 : vector<2xf32> to vector<2x1xf32>
    %cst_216 = arith.constant 3.200000e+01 : f32
    %619 = vector.broadcast %cst_216 : f32 to vector<2x1xf32>
    %620 = arith.divf %618, %619 : vector<2x1xf32>
    %621 = vector.broadcast %620 : vector<2x1xf32> to vector<2x32xf32>
    %622 = arith.subf %614, %621 : vector<2x32xf32>
    %623 = arith.mulf %622, %622 : vector<2x32xf32>
    %cst_217 = arith.constant dense<0.000000e+00> : vector<2xf32>
    %624 = vector.multi_reduction <add>, %623, %cst_217 [1] : vector<2x32xf32> to vector<2xf32>
    %625 = vector.shape_cast %624 : vector<2xf32> to vector<2x1xf32>
    %cst_218 = arith.constant 3.200000e+01 : f32
    %626 = vector.broadcast %cst_218 : f32 to vector<2x1xf32>
    %627 = arith.divf %625, %626 : vector<2x1xf32>
    %cst_219 = arith.constant 9.99999974E-6 : f32
    %628 = vector.broadcast %cst_219 : f32 to vector<2x1xf32>
    %629 = arith.addf %627, %628 : vector<2x1xf32>
    %630 = math.rsqrt %629 : vector<2x1xf32>
    %631 = vector.broadcast %630 : vector<2x1xf32> to vector<2x32xf32>
    %632 = arith.mulf %622, %631 : vector<2x32xf32>
    %633 = vector.broadcast %615 : vector<1x32xf32> to vector<2x32xf32>
    %634 = arith.mulf %632, %633 : vector<2x32xf32>
    %635 = vector.broadcast %616 : vector<1x32xf32> to vector<2x32xf32>
    %636 = arith.addf %634, %635 : vector<2x32xf32>
    %cst_220 = arith.constant 5.000000e-01 : f32
    %637 = vector.broadcast %cst_220 : f32 to vector<2x32xf32>
    %638 = arith.mulf %637, %636 : vector<2x32xf32>
    %cst_221 = arith.constant 0.707106769 : f32
    %639 = vector.broadcast %cst_221 : f32 to vector<2x32xf32>
    %640 = arith.mulf %636, %639 : vector<2x32xf32>
    %cst_222 = arith.constant 0.000000e+00 : f32
    %641 = vector.broadcast %cst_222 : f32 to vector<2x32xf32>
    %642 = arith.cmpf oge, %640, %641 : vector<2x32xf32>
    %cst_223 = arith.constant 1.000000e+00 : f32
    %cst_224 = arith.constant -1.000000e+00 : f32
    %643 = vector.broadcast %cst_223 : f32 to vector<2x32xf32>
    %644 = vector.broadcast %cst_224 : f32 to vector<2x32xf32>
    %645 = arith.select %642, %643, %644 : vector<2x32xi1>, vector<2x32xf32>
    %646 = math.absf %640 : vector<2x32xf32>
    %cst_225 = arith.constant 0.327591091 : f32
    %647 = vector.broadcast %cst_225 : f32 to vector<2x32xf32>
    %648 = arith.mulf %647, %646 : vector<2x32xf32>
    %cst_226 = arith.constant 1.000000e+00 : f32
    %649 = vector.broadcast %cst_226 : f32 to vector<2x32xf32>
    %650 = arith.addf %649, %648 : vector<2x32xf32>
    %cst_227 = arith.constant 1.000000e+00 : f32
    %651 = vector.broadcast %cst_227 : f32 to vector<2x32xf32>
    %652 = arith.divf %651, %650 : vector<2x32xf32>
    %cst_228 = arith.constant 1.06140542 : f32
    %653 = vector.broadcast %cst_228 : f32 to vector<2x32xf32>
    %654 = arith.mulf %653, %652 : vector<2x32xf32>
    %cst_229 = arith.constant -1.45315206 : f32
    %655 = vector.broadcast %cst_229 : f32 to vector<2x32xf32>
    %656 = arith.addf %654, %655 : vector<2x32xf32>
    %657 = arith.mulf %656, %652 : vector<2x32xf32>
    %cst_230 = arith.constant 1.42141378 : f32
    %658 = vector.broadcast %cst_230 : f32 to vector<2x32xf32>
    %659 = arith.addf %657, %658 : vector<2x32xf32>
    %660 = arith.mulf %659, %652 : vector<2x32xf32>
    %cst_231 = arith.constant -0.284496725 : f32
    %661 = vector.broadcast %cst_231 : f32 to vector<2x32xf32>
    %662 = arith.addf %660, %661 : vector<2x32xf32>
    %663 = arith.mulf %662, %652 : vector<2x32xf32>
    %cst_232 = arith.constant 0.254829586 : f32
    %664 = vector.broadcast %cst_232 : f32 to vector<2x32xf32>
    %665 = arith.addf %663, %664 : vector<2x32xf32>
    %666 = arith.mulf %665, %652 : vector<2x32xf32>
    %cst_233 = arith.constant 0.000000e+00 : f32
    %667 = vector.broadcast %cst_233 : f32 to vector<2x32xf32>
    %668 = arith.subf %667, %646 : vector<2x32xf32>
    %669 = arith.mulf %668, %646 : vector<2x32xf32>
    %670 = math.exp %669 : vector<2x32xf32>
    %671 = arith.mulf %666, %670 : vector<2x32xf32>
    %cst_234 = arith.constant 1.000000e+00 : f32
    %672 = vector.broadcast %cst_234 : f32 to vector<2x32xf32>
    %673 = arith.subf %672, %671 : vector<2x32xf32>
    %674 = arith.mulf %645, %673 : vector<2x32xf32>
    %cst_235 = arith.constant 1.000000e+00 : f32
    %675 = vector.broadcast %cst_235 : f32 to vector<2x32xf32>
    %676 = arith.addf %675, %674 : vector<2x32xf32>
    %677 = arith.mulf %638, %676 : vector<2x32xf32>
    %678 = vector.extract_strided_slice %531 {offsets = [1, 0, 0], sizes = [1, 8, 32], strides = [1, 1, 1]} : vector<3x8x32xf32> to vector<1x8x32xf32>
    %679 = vector.shape_cast %678 : vector<1x8x32xf32> to vector<8x32xf32>
    %cst_236 = arith.constant dense<0.000000e+00> : vector<8x2xf32>
    %680 = tpu.matmul %679, %677, %cst_236 {dimension_numbers = #tpu.dot_dimension_numbers<[1], [1], [0], [0], [0, 0, 1, 0], [], []>} : vector<8x32xf32>, vector<2x32xf32>, vector<8x2xf32> -> vector<8x2xf32>
    %681 = vector.extract_strided_slice %531 {offsets = [2, 0, 0], sizes = [1, 8, 1], strides = [1, 1, 1]} : vector<3x8x32xf32> to vector<1x8x1xf32>
    %682 = vector.shape_cast %681 : vector<1x8x1xf32> to vector<8x1xf32>
    %683 = vector.broadcast %682 : vector<8x1xf32> to vector<8x2xf32>
    %684 = arith.addf %680, %683 : vector<8x2xf32>
    %cst_237 = arith.constant dense<0xFF800000> : vector<2xf32>
    %685 = vector.multi_reduction <maximumf>, %684, %cst_237 [0] : vector<8x2xf32> to vector<2xf32>
    %686 = vector.shape_cast %685 : vector<2xf32> to vector<1x2xf32>
    %687 = vector.broadcast %686 : vector<1x2xf32> to vector<8x2xf32>
    %688 = arith.subf %684, %687 : vector<8x2xf32>
    %689 = math.exp %688 : vector<8x2xf32>
    %cst_238 = arith.constant dense<0.000000e+00> : vector<2xf32>
    %690 = vector.multi_reduction <add>, %689, %cst_238 [0] : vector<8x2xf32> to vector<2xf32>
    %691 = vector.shape_cast %690 : vector<2xf32> to vector<1x2xf32>
    %692 = tpu.reciprocal %691 {approx = true} : vector<1x2xf32> -> vector<1x2xf32>
    %693 = vector.broadcast %692 : vector<1x2xf32> to vector<8x2xf32>
    %694 = arith.mulf %689, %693 : vector<8x2xf32>
    %cst_239 = arith.constant dense<0.000000e+00> : vector<8xf32>
    %695 = vector.multi_reduction <add>, %694, %cst_239 [1] : vector<8x2xf32> to vector<8xf32>
    %696 = vector.shape_cast %695 : vector<8xf32> to vector<8x1xf32>
    %cst_240 = arith.constant 2.000000e+00 : f32
    %697 = vector.broadcast %cst_240 : f32 to vector<8x1xf32>
    %698 = arith.divf %696, %697 : vector<8x1xf32>
    %699 = vector.broadcast %698 : vector<8x1xf32> to vector<8x32xf32>
    %700 = arith.mulf %608, %699 : vector<8x32xf32>
    %701 = tpu.concatenate %175, %350, %525, %700 in 1 : vector<8x32xf32>, vector<8x32xf32>, vector<8x32xf32>, vector<8x32xf32> -> vector<8x128xf32>
    %c0_241 = arith.constant 0 : index
    %c0_242 = arith.constant 0 : index
    %702 = vector.load %arg4[%c0_241, %c0_242] : memref<8x128xf32, #tpu.memory_space<vmem>>, vector<8x128xf32>
    tpu.vector_store %arg4[%c0_241, %c0_242], %701 {strides = array<i32>} : memref<8x128xf32, #tpu.memory_space<vmem>>, vector<8x128xf32>,
    return
  }
}

</mosaic_0001>

<bundles_post_ra>
// kernel: tpu_custom_call.1
= control target key start
LH: loop header
LB: loop body
LE: loop exit
PB: predicated region body
PF: predicated region fallthrough
CT: control target
= control target key end

     0   :  { %9 = vsyncpa [#allocation3], 0  ;;  %s2688_s0 = inlined_call_operand.hbm [shape: f32[4,3,8,32], index: 0, kind: input, shape index: {}]   ;;  %s2689_s1 = inlined_call_operand.hbm [shape: f32[4,3,32,32], index: 1, kind: input, shape index: {}]   ;;  %s2690_s2 = inlined_call_operand.vmem [shape: f32[4,7,32], index: 2, kind: input, shape index: {}]   ;;  %s2691_s3 = inlined_call_operand.vmem [shape: f32[2,32], index: 3, kind: input, shape index: {}]   ;;  %s2692_s4 = inlined_call_operand.hbm [shape: f32[8,128], index: 4, kind: output, shape index: {}]  }
   0x1   :  { %10 = vsyncpa [#allocation6], 0 }
   0x2   :  { %11 = vsyncpa [#allocation4], 0  ;;  %s2362_s15 = smov [#allocation2]   ;;  %s2290_s19 = scalar_lea.hbm %s2688_s0, 1536 }
   0x3   :  { %s17_s16 = sshll.u32 %s2362_s15, 4  ;;  %p2291_p0 = scmp.ne.s32.totalorder %s2688_s0, %s2290_s19  ;;  %s18_s16 = int_to_ptr.vmem [resolvable:$true] %s17_s16 }
   0x4   :  { %p2294_p1 = scmp.lt.u32.totalorder %s2290_s19, %s2688_s0 }
   0x6   :  { %p2296_p2 = pnand %p2294_p1, %p2291_p0 }
   0x8   :  { %2299 = shalt.err (!%p2296_p2)
}
   0x9   :  { %s2300_s24 = scalar_lea.vmem %s18_s16, 1536  ;;  %p2305_p4 = scmp.lt.s32.totalorder %s18_s16, %s18_s16 }
   0xa   :  { %p2301_p3 = scmp.ne.s32.totalorder %s18_s16, %s2300_s24  ;;  %p2306_p5 = scmp.lt.s32.totalorder %s2300_s24, %s2300_s24 }
   0xc   :  { %p2307_p6 = por %p2306_p5, %p2305_p4 }
   0xe   :  { %p2308_p7 = pnand %p2307_p6, %p2301_p3 }
  0x10   :  { %2311 = shalt.err (!%p2308_p7)
}
  0x11   :  { %s2363_s25 = smov 128   ;;  %s2364_s26 = smov 8  }
  0x12   :  { %23 = dma.hbm_to_vmem [thread:$0]  %s2688_s0, 1536, %s18_s16, [#allocation3], %s2363_s25, %s2363_s25, %s2364_s26  }
  0x13   :  { %s2365_s29 = smov [#allocation5]   ;;  %s2312_s7 = scalar_lea.hbm %s2689_s1, 6144 }
  0x14   :  { %s29_s30 = sshll.u32 %s2365_s29, 4  ;;  %p2313_p8 = scmp.ne.s32.totalorder %s2689_s1, %s2312_s7  ;;  %s30_s30 = int_to_ptr.vmem [resolvable:$true] %s29_s30 }
  0x15   :  { %p2316_p9 = scmp.lt.u32.totalorder %s2312_s7, %s2689_s1 }
  0x17   :  { %p2318_p10 = pnand %p2316_p9, %p2313_p8 }
  0x19   :  { %2321 = shalt.err (!%p2318_p10)
}
  0x1a   :  { %s2322_s12 = scalar_lea.vmem %s30_s30, 6144  ;;  %p2327_p12 = scmp.lt.s32.totalorder %s30_s30, %s30_s30 }
  0x1b   :  { %p2323_p11 = scmp.ne.s32.totalorder %s30_s30, %s2322_s12  ;;  %p2328_p13 = scmp.lt.s32.totalorder %s2322_s12, %s2322_s12 }
  0x1d   :  { %p2329_p0 = por %p2328_p13, %p2327_p12 }
  0x1f   :  { %p2330_p1 = pnand %p2329_p0, %p2323_p11 }
  0x21   :  { %2333 = shalt.err (!%p2330_p1)
}
  0x22   :  { %35 = dma.hbm_to_vmem [thread:$0]  %s2689_s1, 6144, %s30_s30, [#allocation6], %s2363_s25, %s2363_s25, %s2364_s26  }
  0x23   :  { %2356 = dma.done.wait [#allocation3], 1536  }
  0x24   :  { %2357 = vsyncadd [#allocation3], 4294965760 }
  0x25   :  { %2358 = dma.done.wait [#allocation6], 6144  }
  0x26   :  { %2359 = vsyncadd [#allocation6], 4294961152  ;;  %v2366_v0 = vmov 0.0|0.0   ;;  %vm2367_vm0 = vmmov 0   ;;  %v2368_v1 = vmov 0.0   ;;  %v48_v2 = vld [vmem:[#allocation5] sm:$0xff]  ;;  %v63_v16 = vlaneseq }
  0x27   :  { %2137 = vmatprep.subr.bf16.mxu0 %v2366_v0  ;;  %1993 = vmatprep.mubr.msk.f32.mxu0 %vm2367_vm0, %v2368_v1  ;;  %v49_v3 = vld [vmem:[#allocation5 + $0x8] sm:$0xff]  ;;  %v50_v4 = vld [vmem:[#allocation5 + $0x10] sm:$0xff]  ;;  %v51_v6 = vld [vmem:[#allocation5 + $0x18] sm:$0xff]  ;;  %vm67_vm1 = vcmask 261120   ;;  %vm346_vm2 = vcmask 254976   ;;  %vm478_vm9 = vcmask 15360  }
  0x28   :  { %2143 = vmatprep.subr.bf16.mxu1 %v2366_v0  ;;  %2004 = vmatprep.mubr.msk.f32.mxu1 %vm2367_vm0, %v2368_v1  ;;  %v2138_v5 = vpack.c.bf16 %v49_v3, %v48_v2  ;;  %v2141_v7 = vpack.c.bf16 %v51_v6, %v50_v4  ;;  %v56_v8 = vld [vmem:[#allocation5 + $0x40] sm:$0xff]  ;;  %v57_v9 = vld [vmem:[#allocation5 + $0x48] sm:$0xff]  ;;  %v58_v12 = vld [vmem:[#allocation5 + $0x50] sm:$0xff]  ;;  %v2446_v17 = vshrl.u32 %v63_v16, 7  ;;  %s2371_s22 = smov 64   ;;  %s2372_s25 = smov 32  }
  0x29   :  { %v60_v10 = vld [vmem:[#allocation2] sm:$0xff]  ;;  %v2150_v11 = vpack.c.bf16 %v57_v9, %v56_v8  ;;  %v59_v13 = vld [vmem:[#allocation5 + $0x58] sm:$0xff]  ;;  %v53_v42 = vld [vmem:[#allocation5 + $0x28] sm:$0xff]  ;;  %s2373_s26 = smov 96   ;;  %vm1873_vm12 = vcmask 523264   ;;  %s2374_s29 = smov [#allocation7]  }
  0x2a   :  { %2139 = vmatpush3.bf16.msra.mxu0 %v2138_v5  ;;  %v2153_v14 = vpack.c.bf16 %v59_v13, %v58_v12  ;;  %v2439_v15 = vld [vmem:[%s2691_s3] sm:$0x3]  ;;  %v2449_v18 = vsub.s32 0, %v2446_v17  ;;  %v2459_v24 = vsub.s32 4, %v2446_v17  ;;  %v54_v43 = vld [vmem:[#allocation5 + $0x30] sm:$0xff]  ;;  %v55_v45 = vld [vmem:[#allocation5 + $0x38] sm:$0xff] }
  0x2b   :  { %2140 = vmatprep.subr.bf16.mxu0 %v2366_v0  ;;  %v2454_v19 = vld [vmem:[%s2690_s2] sm:$0x7f]  ;;  %v2147_v46 = vpack.c.bf16 %v55_v45, %v54_v43  ;;  %v2470_v52 = vsub.s32 1, %v2446_v17  ;;  %v2473_v54 = vsub.s32 2, %v2446_v17  ;;  %v2480_v59 = vsub.s32 5, %v2446_v17  ;;  %s1884_s30 = sshll.u32 %s2374_s29, 4  ;;  %s1885_s30 = int_to_ptr.vmem [resolvable:$true] %s1884_s30 }
  0x2c   :  { %v66_v20 = vrot.slane %v2454_v19, %v2449_v18  ;;  %v272_v26 = vrot.slane %v2454_v19, %v2459_v24  ;;  %v52_v41 = vld [vmem:[#allocation5 + $0x20] sm:$0xff]  ;;  %v2483_v62 = vsub.s32 6, %v2446_v17  ;;  %vm1875_vm13 = vcmask 785408   ;;  %p2339_p3 = scmp.lt.s32.totalorder %s1885_s30, %s1885_s30 }
  0x2d   :  { %v2144_v44 = vpack.c.bf16 %v53_v42, %v52_v41  ;;  %v158_v55 = vrot.slane %v2454_v19, %v2470_v52  ;;  %v163_v58 = vrot.slane %v2454_v19, %v2473_v54  ;;  %v363_v63 = vrot.slane %v2454_v19, %v2480_v59 }
  0x2e   :  { %2142 = vmatpush3.bf16.msra.mxu0 %v2141_v7  ;;  %v368_v6 = vrot.slane %v2454_v19, %v2483_v62 }
  0x2f   :  { %2149 = vmatprep.subr.bf16.mxu0 %v2366_v0  ;;  %2145 = vmatpush3.bf16.msra.mxu1 %v2144_v44 }
  0x30   :  { %2146 = vmatprep.subr.bf16.mxu1 %v2366_v0 }
  0x31   :  { %1994 = vmatmul.mubr.msk.f32.vlgmr.msra.gmra.mrb[0].mxu0 %vm67_vm1, %v60_v10 }
  0x32   :  { %2151 = vmatpush3.bf16.msra.mxu0 %v2150_v11  ;;  %2015 = vmatprep.mubr.msk.f32.mxu0 %vm2367_vm0, %v2368_v1 }
  0x33   :  { %2152 = vmatprep.subr.bf16.mxu0 %v2366_v0  ;;  %2148 = vmatpush3.bf16.msra.mxu1 %v2147_v46  ;;  %v2369_v46 = vmov -1.0  }
  0x34   :  { %2018 = vmatprep.subr.mxu1 %v2368_v1 }
  0x36   :  { %2154 = vmatpush3.bf16.msra.mxu0 %v2153_v14 }
  0x37   :  { %2161 = vmatprep.subr.bf16.mxu0 %v2366_v0 }
  0x39   :  { %2016 = vmatmul.mubr.msk.f32.vlgmr.msra.gmra.mrb[2].mxu0 %vm67_vm1, %v2439_v15 }
  0x3a   :  { %2042 = vmatprep.mubr.msk.f32.mxu0 %vm2367_vm0, %v2368_v1 }
 0x104   :  { %v137_v21 = vpop.f32.mrb[0].mxu0 }
 0x105   :  { %v138_v22 = vadd.f32 %v137_v21, %v66_v20  ;;  %v1995_v23 = vpop.f32.mrb[1].mxu0 }
 0x107   :  { %v141_v25 = vsel %vm67_vm1, %v138_v22, 0.0 }
 0x108   :  { %142 = vadd.xlane.f32.xlu0 %v141_v25 }
 0x10c   :  { %v342_v27 = vpop.f32.mrb[2].mxu0 }
 0x10d   :  { %v343_v28 = vadd.f32 %v342_v27, %v272_v26  ;;  %v2017_v29 = vpop.f32.mrb[3].mxu0 }
 0x10f   :  { %v347_v30 = vsel %vm346_vm2, %v343_v28, 0.0 }
 0x110   :  { %348 = vadd.xlane.f32.xlu0 %v347_v30 }
 0x195   :  { %v143_v31 = vpop.xlane.xlu0 %142 }
 0x196   :  { %v145_v32 = vmul.f32 0.03125, %v143_v31 }
 0x198   :  { %v146_v33 = vsub.f32 %v138_v22, %v145_v32 }
 0x19a   :  { %v147_v34 = vmul.f32 %v146_v33, %v146_v33 }
 0x19c   :  { %v148_v35 = vsel %vm67_vm1, %v147_v34, 0.0 }
 0x19d   :  { %149 = vadd.xlane.f32.xlu1 %v148_v35  ;;  %v349_v36 = vpop.xlane.xlu0 %348 }
 0x19e   :  { %v350_v37 = vmul.f32 0.03125, %v349_v36 }
 0x1a0   :  { %v351_v38 = vsub.f32 %v343_v28, %v350_v37 }
 0x1a2   :  { %v352_v39 = vmul.f32 %v351_v38, %v351_v38 }
 0x1a4   :  { %v353_v40 = vsel %vm346_vm2, %v352_v39, 0.0 }
 0x1a5   :  { %354 = vadd.xlane.f32.xlu1 %v353_v40 }
 0x22a   :  { %v150_v47 = vpop.xlane.xlu1 %149 }
 0x22b   :  { %v151_v48 = vmul.f32 0.03125, %v150_v47 }
 0x22d   :  { %v152_v49 = vadd.f32 1e-05, %v151_v48 }
 0x22f   :  { %2224 = vrsqrt.f32 %v152_v49 }
 0x232   :  { %v355_v50 = vpop.xlane.xlu1 %354 }
 0x233   :  { %v356_v51 = vmul.f32 0.03125, %v355_v50 }
 0x235   :  { %v357_v53 = vadd.f32 1e-05, %v356_v51 }
 0x237   :  { %2226 = vrsqrt.f32 %v357_v53 }
 0x239   :  { %v2225_v56 = vpop.eup %2224 }
 0x23a   :  { %v154_v57 = vmul.f32 %v2225_v56, %v146_v33 }
 0x23c   :  { %v159_v60 = vmul.f32 %v158_v55, %v154_v57 }
 0x23e   :  { %v164_v61 = vadd.f32 %v163_v58, %v159_v60 }
 0x240   :  { %v166_v2 = vmul.f32 0.70710677, %v164_v61  ;;  %v165_v50 = vmul.f32 0.5, %v164_v61 }
 0x241   :  { %v2227_v3 = vpop.eup %2226 }
 0x242   :  { %v359_v4 = vmul.f32 %v2227_v3, %v351_v38  ;;  %v169_v5 = vand.u32 2147483647, %v166_v2  ;;  %vm167_vm3 = vcmp.ge.f32.partialorder %v166_v2, 0.0 }
 0x243   :  { %v168_v47 = vsel %vm167_vm3, 1.0, %v2369_v46 }
 0x244   :  { %v364_v7 = vmul.f32 %v363_v63, %v359_v4  ;;  %v170_v8 = vmul.f32 0.3275911, %v169_v5  ;;  %v183_v14 = vsub.f32 0.0, %v169_v5  ;;  %v507_v4 = vld [vmem:[#allocation5 + $0x60] sm:$0xff] }
 0x246   :  { %v171_v9 = vadd.f32 1.0, %v170_v8  ;;  %v369_v10 = vadd.f32 %v368_v6, %v364_v7  ;;  %v184_v21 = vmul.f32 %v183_v14, %v169_v5  ;;  %v508_v5 = vld [vmem:[#allocation5 + $0x68] sm:$0xff]  ;;  %v509_v8 = vld [vmem:[#allocation5 + $0x70] sm:$0xff] }
 0x247   :  { %v61_v6 = vld [vmem:[#allocation2 + $0x8] sm:$0xff]  ;;  %v2156_v7 = vpack.c.bf16 %v508_v5, %v507_v4 }
 0x248   :  { %2228 = vrcp.f32 %v171_v9  ;;  %v371_v11 = vmul.f32 0.70710677, %v369_v10  ;;  %v185_v25 = vmul.f32 1.442695, %v184_v21  ;;  %v370_v2 = vmul.f32 0.5, %v369_v10  ;;  %v510_v9 = vld [vmem:[#allocation5 + $0x78] sm:$0xff] }
 0x249   :  { %v515_v10 = vld [vmem:[#allocation5 + $0xa0] sm:$0xff] }
 0x24a   :  { %v374_v12 = vand.u32 2147483647, %v371_v11  ;;  %vm372_vm4 = vcmp.ge.f32.partialorder %v371_v11, 0.0  ;;  %v2159_v11 = vpack.c.bf16 %v510_v9, %v509_v8 }
 0x24b   :  { %v373_v60 = vsel %vm372_vm4, 1.0, %v2369_v46 }
 0x24c   :  { %v375_v13 = vmul.f32 0.3275911, %v374_v12  ;;  %v388_v26 = vsub.f32 0.0, %v374_v12 }
 0x24e   :  { %v376_v16 = vadd.f32 1.0, %v375_v13  ;;  %v389_v29 = vmul.f32 %v388_v26, %v374_v12  ;;  %v516_v12 = vld [vmem:[#allocation5 + $0xa8] sm:$0xff]  ;;  %v520_v13 = vld [vmem:[#allocation2 + $0x18] sm:$0xff] }
 0x24f   :  { %v2168_v14 = vpack.c.bf16 %v516_v12, %v515_v10 }
 0x250   :  { %2230 = vrcp.f32 %v376_v16  ;;  %v390_v34 = vmul.f32 1.442695, %v389_v29  ;;  %v517_v16 = vld [vmem:[#allocation5 + $0xb0] sm:$0xff] }
 0x251   :  { %2232 = vpow2.f32 %v185_v25 }
 0x252   :  { %v2229_v20 = vpop.eup %2228  ;;  %2234 = vpow2.f32 %v390_v34 }
 0x253   :  { %v174_v22 = vmul.f32 1.0614054, %v2229_v20 }
 0x255   :  { %v175_v23 = vadd.f32 -1.4531521, %v174_v22 }
 0x257   :  { %v176_v27 = vmul.f32 %v2229_v20, %v175_v23 }
 0x259   :  { %v177_v28 = vadd.f32 1.4214138, %v176_v27  ;;  %v1899_v27 = vld [vmem:[%s2690_s2 + $0x8] sm:$0x7f] }
 0x25a   :  { %v2231_v19 = vpop.eup %2230  ;;  %v817_v8 = vrot.slane %v1899_v27, %v2480_v59 }
 0x25b   :  { %v178_v30 = vmul.f32 %v2229_v20, %v177_v28  ;;  %v379_v31 = vmul.f32 1.0614054, %v2231_v19  ;;  %v2233_v41 = vpop.eup %2232  ;;  %v526_v28 = vrot.slane %v1899_v27, %v2449_v18 }
 0x25c   :  { %v2235_v55 = vpop.eup %2234 }
 0x25d   :  { %v179_v32 = vadd.f32 -0.28449672, %v178_v30  ;;  %v380_v33 = vadd.f32 -1.4531521, %v379_v31 }
 0x25f   :  { %v180_v35 = vmul.f32 %v2229_v20, %v179_v32  ;;  %v381_v36 = vmul.f32 %v2231_v19, %v380_v33  ;;  %v730_v32 = vrot.slane %v1899_v27, %v2459_v24 }
 0x261   :  { %v181_v37 = vadd.f32 0.2548296, %v180_v35  ;;  %v382_v38 = vadd.f32 1.4214138, %v381_v36 }
 0x263   :  { %v182_v39 = vmul.f32 %v2229_v20, %v181_v37  ;;  %v383_v40 = vmul.f32 %v2231_v19, %v382_v38  ;;  %v518_v20 = vld [vmem:[#allocation5 + $0xb8] sm:$0xff] }
 0x264   :  { %v2171_v21 = vpack.c.bf16 %v518_v20, %v517_v16 }
 0x265   :  { %v187_v42 = vmul.f32 %v2233_v41, %v182_v39  ;;  %v384_v43 = vadd.f32 -0.28449672, %v383_v40 }
 0x267   :  { %v188_v44 = vsub.f32 1.0, %v187_v42  ;;  %v385_v45 = vmul.f32 %v2231_v19, %v384_v43 }
 0x269   :  { %v189_v48 = vmul.f32 %v188_v44, %v168_v47  ;;  %v386_v49 = vadd.f32 0.2548296, %v385_v45 }
 0x26b   :  { %v190_v51 = vadd.f32 1.0, %v189_v48  ;;  %v387_v53 = vmul.f32 %v2231_v19, %v386_v49  ;;  %v511_v48 = vld [vmem:[#allocation5 + $0x80] sm:$0xff]  ;;  %v512_v49 = vld [vmem:[#allocation5 + $0x88] sm:$0xff] }
 0x26d   :  { %v191_v56 = vmul.f32 %v190_v51, %v165_v50  ;;  %v392_v57 = vmul.f32 %v2235_v55, %v387_v53  ;;  %v513_v50 = vld [vmem:[#allocation5 + $0x90] sm:$0xff]  ;;  %v2162_v51 = vpack.c.bf16 %v512_v49, %v511_v48  ;;  %v514_v53 = vld [vmem:[#allocation5 + $0x98] sm:$0xff] }
 0x26e   :  { %v2165_v55 = vpack.c.bf16 %v514_v53, %v513_v50 }
 0x26f   :  { %2005 = vmatmul.mubr.msk.f32.vlgmr.msra.gmra.mrb[0].mxu1 %vm67_vm1, %v191_v56  ;;  %v393_v58 = vsub.f32 1.0, %v392_v57  ;;  %2163 = vmatpush3.bf16.msra.mxu0 %v2162_v51 }
 0x270   :  { %2020 = vmatprep.mubr.msk.f32.mxu1 %vm2367_vm0, %v2368_v1  ;;  %2164 = vmatprep.subr.bf16.mxu0 %v2366_v0 }
 0x271   :  { %v394_v63 = vmul.f32 %v393_v58, %v373_v60 }
 0x273   :  { %v395_v3 = vadd.f32 1.0, %v394_v63  ;;  %2166 = vmatpush3.bf16.msra.mxu0 %v2165_v55 }
 0x274   :  { %2056 = vmatprep.subr.mxu0 %v2368_v1 }
 0x275   :  { %v396_v61 = vmul.f32 %v395_v3, %v370_v2  ;;  %v616_v3 = vrot.slane %v1899_v27, %v2470_v52 }
 0x277   :  { %2019 = vmatpush3.xpose.msk.msra.mxu1 %vm67_vm1, %v396_v61  ;;  %v621_v61 = vrot.slane %v1899_v27, %v2473_v54 }
 0x278   :  { %2155 = vmatprep.subr.bf16.mxu1 %v2366_v0 }
 0x27a   :  { %2021 = vmatmul.mubr.msk.f32.vlgmr.msra.gmra.mrb[2].mxu1 %vm67_vm1, %v61_v6 }
 0x27b   :  { %2157 = vmatpush3.bf16.msra.mxu1 %v2156_v7  ;;  %2031 = vmatprep.mubr.msk.f32.mxu1 %vm2367_vm0, %v2368_v1 }
 0x27c   :  { %2158 = vmatprep.subr.bf16.mxu1 %v2366_v0 }
 0x27f   :  { %2160 = vmatpush3.bf16.msra.mxu1 %v2159_v11 }
 0x280   :  { %2167 = vmatprep.subr.bf16.mxu1 %v2366_v0 }
 0x282   :  { %2032 = vmatmul.mubr.msk.f32.vlgmr.msra.gmra.mrb[4].mxu1 %vm67_vm1, %v520_v13  ;;  %v822_v13 = vrot.slane %v1899_v27, %v2483_v62 }
 0x283   :  { %2169 = vmatpush3.bf16.msra.mxu1 %v2168_v14  ;;  %2053 = vmatprep.mubr.msk.f32.mxu1 %vm2367_vm0, %v2368_v1 }
 0x284   :  { %2170 = vmatprep.subr.bf16.mxu1 %v2366_v0 }
 0x287   :  { %2172 = vmatpush3.bf16.msra.mxu1 %v2171_v21 }
 0x288   :  { %2179 = vmatprep.subr.bf16.mxu1 %v2366_v0 }
 0x28a   :  { %2054 = vmatmul.mubr.msk.f32.vlgmr.msra.gmra.mrb[6].mxu1 %vm67_vm1, %v2439_v15 }
 0x28b   :  { %2080 = vmatprep.mubr.msk.f32.mxu1 %vm2367_vm0, %v2368_v1 }
 0x342   :  { %v2510_v22 = vpop.f32.mrb[0].mxu1 }
 0x343   :  { %v2006_v23 = vpop.f32.mrb[1].mxu1 }
 0x34d   :  { %v2512_v25 = vpop.f32.mrb[2].mxu1 }
 0x34e   :  { %v2022_v26 = vpop.f32.mrb[3].mxu1 }
 0x355   :  { %v596_v19 = vpop.f32.mrb[4].mxu1 }
 0x356   :  { %v597_v29 = vadd.f32 %v596_v19, %v526_v28  ;;  %v2033_v30 = vpop.f32.mrb[5].mxu1 }
 0x358   :  { %v600_v31 = vsel %vm67_vm1, %v597_v29, 0.0 }
 0x359   :  { %601 = vadd.xlane.f32.xlu0 %v600_v31 }
 0x35d   :  { %v797_v33 = vpop.f32.mrb[6].mxu1 }
 0x35e   :  { %v798_v34 = vadd.f32 %v797_v33, %v730_v32  ;;  %v2055_v35 = vpop.f32.mrb[7].mxu1 }
 0x360   :  { %v801_v36 = vsel %vm346_vm2, %v798_v34, 0.0 }
 0x361   :  { %802 = vadd.xlane.f32.xlu1 %v801_v36 }
 0x3e6   :  { %v602_v37 = vpop.xlane.xlu0 %601 }
 0x3e7   :  { %v603_v38 = vmul.f32 0.03125, %v602_v37 }
 0x3e9   :  { %v604_v39 = vsub.f32 %v597_v29, %v603_v38 }
 0x3eb   :  { %v605_v40 = vmul.f32 %v604_v39, %v604_v39 }
 0x3ed   :  { %v606_v41 = vsel %vm67_vm1, %v605_v40, 0.0 }
 0x3ee   :  { %607 = vadd.xlane.f32.xlu0 %v606_v41  ;;  %v803_v42 = vpop.xlane.xlu1 %802 }
 0x3ef   :  { %v804_v43 = vmul.f32 0.03125, %v803_v42 }
 0x3f1   :  { %v805_v44 = vsub.f32 %v798_v34, %v804_v43 }
 0x3f3   :  { %v806_v45 = vmul.f32 %v805_v44, %v805_v44 }
 0x3f5   :  { %v807_v47 = vsel %vm346_vm2, %v806_v45, 0.0 }
 0x3f6   :  { %808 = vadd.xlane.f32.xlu1 %v807_v47 }
 0x47b   :  { %v608_v56 = vpop.xlane.xlu0 %607 }
 0x47c   :  { %v609_v57 = vmul.f32 0.03125, %v608_v56 }
 0x47e   :  { %v610_v58 = vadd.f32 1e-05, %v609_v57 }
 0x480   :  { %2236 = vrsqrt.f32 %v610_v58 }
 0x483   :  { %v809_v60 = vpop.xlane.xlu1 %808 }
 0x484   :  { %v810_v63 = vmul.f32 0.03125, %v809_v60 }
 0x486   :  { %v811_v2 = vadd.f32 1e-05, %v810_v63 }
 0x488   :  { %2238 = vrsqrt.f32 %v811_v2 }
 0x48a   :  { %v2237_v4 = vpop.eup %2236 }
 0x48b   :  { %v612_v5 = vmul.f32 %v2237_v4, %v604_v39 }
 0x48d   :  { %v617_v6 = vmul.f32 %v616_v3, %v612_v5 }
 0x48f   :  { %v622_v7 = vadd.f32 %v621_v61, %v617_v6 }
 0x491   :  { %v624_v9 = vmul.f32 0.70710677, %v622_v7  ;;  %v623_v2 = vmul.f32 0.5, %v622_v7 }
 0x492   :  { %v2239_v11 = vpop.eup %2238 }
 0x493   :  { %v813_v10 = vmul.f32 %v2239_v11, %v805_v44  ;;  %v627_v12 = vand.u32 2147483647, %v624_v9  ;;  %vm625_vm5 = vcmp.ge.f32.partialorder %v624_v9, 0.0 }
 0x494   :  { %v626_v58 = vsel %vm625_vm5, 1.0, %v2369_v46 }
 0x495   :  { %v818_v14 = vmul.f32 %v817_v8, %v813_v10  ;;  %v628_v16 = vmul.f32 0.3275911, %v627_v12  ;;  %v641_v19 = vsub.f32 0.0, %v627_v12 }
 0x497   :  { %v629_v20 = vadd.f32 1.0, %v628_v16  ;;  %v823_v21 = vadd.f32 %v822_v13, %v818_v14  ;;  %v642_v31 = vmul.f32 %v641_v19, %v627_v12  ;;  %v959_v13 = vld [vmem:[#allocation5 + $0xc0] sm:$0xff]  ;;  %v960_v14 = vld [vmem:[#allocation5 + $0xc8] sm:$0xff] }
 0x498   :  { %v521_v16 = vld [vmem:[#allocation2 + $0x20] sm:$0xff]  ;;  %v968_v19 = vld [vmem:[#allocation5 + $0x108] sm:$0xff] }
 0x499   :  { %2240 = vrcp.f32 %v629_v20  ;;  %v825_v23 = vmul.f32 0.70710677, %v823_v21  ;;  %v643_v34 = vmul.f32 1.442695, %v642_v31  ;;  %v824_v10 = vmul.f32 0.5, %v823_v21  ;;  %v967_v21 = vld [vmem:[#allocation5 + $0x100] sm:$0xff] }
 0x49a   :  { %v2174_v20 = vpack.c.bf16 %v960_v14, %v959_v13  ;;  %v969_v31 = vld [vmem:[#allocation5 + $0x110] sm:$0xff] }
 0x49b   :  { %v828_v26 = vand.u32 2147483647, %v825_v23  ;;  %vm826_vm6 = vcmp.ge.f32.partialorder %v825_v23, 0.0  ;;  %v961_v23 = vld [vmem:[#allocation5 + $0xd0] sm:$0xff] }
 0x49c   :  { %v827_v9 = vsel %vm826_vm6, 1.0, %v2369_v46 }
 0x49d   :  { %v829_v28 = vmul.f32 0.3275911, %v828_v26  ;;  %v842_v35 = vsub.f32 0.0, %v828_v26 }
 0x49f   :  { %v830_v29 = vadd.f32 1.0, %v829_v28  ;;  %v843_v38 = vmul.f32 %v842_v35, %v828_v26  ;;  %v962_v26 = vld [vmem:[#allocation5 + $0xd8] sm:$0xff] }
 0x4a0   :  { %v2177_v28 = vpack.c.bf16 %v962_v26, %v961_v23 }
 0x4a1   :  { %2242 = vrcp.f32 %v830_v29  ;;  %v844_v43 = vmul.f32 1.442695, %v843_v38  ;;  %v972_v29 = vld [vmem:[#allocation2 + $0x30] sm:$0xff] }
 0x4a2   :  { %2244 = vpow2.f32 %v643_v34 }
 0x4a3   :  { %v2241_v30 = vpop.eup %2240  ;;  %2246 = vpow2.f32 %v844_v43 }
 0x4a4   :  { %v632_v32 = vmul.f32 1.0614054, %v2241_v30 }
 0x4a6   :  { %v633_v33 = vadd.f32 -1.4531521, %v632_v32  ;;  %v970_v32 = vld [vmem:[#allocation5 + $0x118] sm:$0xff] }
 0x4a8   :  { %v634_v36 = vmul.f32 %v2241_v30, %v633_v33  ;;  %v2189_v33 = vpack.c.bf16 %v970_v32, %v969_v31 }
 0x4aa   :  { %v635_v37 = vadd.f32 1.4214138, %v634_v36 }
 0x4ab   :  { %v2243_v27 = vpop.eup %2242 }
 0x4ac   :  { %v636_v39 = vmul.f32 %v2241_v30, %v635_v37  ;;  %v833_v40 = vmul.f32 1.0614054, %v2243_v27  ;;  %v2245_v51 = vpop.eup %2244 }
 0x4ad   :  { %v2247_v5 = vpop.eup %2246 }
 0x4ae   :  { %v637_v41 = vadd.f32 -0.28449672, %v636_v39  ;;  %v834_v42 = vadd.f32 -1.4531521, %v833_v40 }
 0x4b0   :  { %v638_v44 = vmul.f32 %v2241_v30, %v637_v41  ;;  %v835_v45 = vmul.f32 %v2243_v27, %v834_v42 }
 0x4b2   :  { %v639_v47 = vadd.f32 0.2548296, %v638_v44  ;;  %v836_v48 = vadd.f32 1.4214138, %v835_v45 }
 0x4b4   :  { %v640_v49 = vmul.f32 %v2241_v30, %v639_v47  ;;  %v837_v50 = vmul.f32 %v2243_v27, %v836_v48  ;;  %v2186_v30 = vpack.c.bf16 %v968_v19, %v967_v21 }
 0x4b6   :  { %v645_v53 = vmul.f32 %v2245_v51, %v640_v49  ;;  %v838_v55 = vadd.f32 -0.28449672, %v837_v50 }
 0x4b8   :  { %v646_v56 = vsub.f32 1.0, %v645_v53  ;;  %v839_v57 = vmul.f32 %v2243_v27, %v838_v55 }
 0x4ba   :  { %v647_v60 = vmul.f32 %v646_v56, %v626_v58  ;;  %v840_v63 = vadd.f32 0.2548296, %v839_v57 }
 0x4bc   :  { %v648_v3 = vadd.f32 1.0, %v647_v60  ;;  %v841_v4 = vmul.f32 %v2243_v27, %v840_v63  ;;  %v2557_v27 = vld [vmem:[%s2690_s2 + $0x10] sm:$0x7f] }
 0x4bd   :  { %v978_v38 = vrot.slane %v2557_v27, %v2449_v18  ;;  %v1182_v43 = vrot.slane %v2557_v27, %v2459_v24  ;;  %v1068_v14 = vrot.slane %v2557_v27, %v2470_v52  ;;  %v1274_v31 = vrot.slane %v2557_v27, %v2483_v62 }
 0x4be   :  { %v649_v61 = vmul.f32 %v648_v3, %v623_v2  ;;  %v846_v6 = vmul.f32 %v2247_v5, %v841_v4  ;;  %v963_v2 = vld [vmem:[#allocation5 + $0xe0] sm:$0xff]  ;;  %v964_v3 = vld [vmem:[#allocation5 + $0xe8] sm:$0xff]  ;;  %v965_v4 = vld [vmem:[#allocation5 + $0xf0] sm:$0xff] }
 0x4bf   :  { %v2180_v5 = vpack.c.bf16 %v964_v3, %v963_v2 }
 0x4c0   :  { %2043 = vmatmul.mubr.msk.f32.vlgmr.msra.gmra.mrb[4].mxu0 %vm67_vm1, %v649_v61  ;;  %v847_v8 = vsub.f32 1.0, %v846_v6  ;;  %v966_v61 = vld [vmem:[#allocation5 + $0xf8] sm:$0xff] }
 0x4c1   :  { %2058 = vmatprep.mubr.msk.f32.mxu0 %vm2367_vm0, %v2368_v1  ;;  %2181 = vmatpush3.bf16.msra.mxu1 %v2180_v5  ;;  %v2183_v6 = vpack.c.bf16 %v966_v61, %v965_v4 }
 0x4c2   :  { %v848_v11 = vmul.f32 %v847_v8, %v827_v9  ;;  %2182 = vmatprep.subr.bf16.mxu1 %v2366_v0 }
 0x4c4   :  { %v849_v12 = vadd.f32 1.0, %v848_v11 }
 0x4c5   :  { %2184 = vmatpush3.bf16.msra.mxu1 %v2183_v6 }
 0x4c6   :  { %v850_v7 = vmul.f32 %v849_v12, %v824_v10  ;;  %2094 = vmatprep.subr.mxu1 %v2368_v1 }
 0x4c8   :  { %2057 = vmatpush3.xpose.msk.msra.mxu0 %vm67_vm1, %v850_v7 }
 0x4c9   :  { %2173 = vmatprep.subr.bf16.mxu0 %v2366_v0 }
 0x4cb   :  { %2059 = vmatmul.mubr.msk.f32.vlgmr.msra.gmra.mrb[6].mxu0 %vm67_vm1, %v521_v16 }
 0x4cc   :  { %2175 = vmatpush3.bf16.msra.mxu0 %v2174_v20  ;;  %2069 = vmatprep.mubr.msk.f32.mxu0 %vm2367_vm0, %v2368_v1  ;;  %v1073_v20 = vrot.slane %v2557_v27, %v2473_v54 }
 0x4cd   :  { %2176 = vmatprep.subr.bf16.mxu0 %v2366_v0 }
 0x4d0   :  { %2178 = vmatpush3.bf16.msra.mxu0 %v2177_v28  ;;  %v1269_v28 = vrot.slane %v2557_v27, %v2480_v59 }
 0x4d1   :  { %2185 = vmatprep.subr.bf16.mxu0 %v2366_v0 }
 0x4d3   :  { %2070 = vmatmul.mubr.msk.f32.vlgmr.msra.gmra.mrb[8].mxu0 %vm67_vm1, %v972_v29 }
 0x4d4   :  { %2187 = vmatpush3.bf16.msra.mxu0 %v2186_v30  ;;  %2091 = vmatprep.mubr.msk.f32.mxu0 %vm2367_vm0, %v2368_v1 }
 0x4d5   :  { %2188 = vmatprep.subr.bf16.mxu0 %v2366_v0 }
 0x4d8   :  { %2190 = vmatpush3.bf16.msra.mxu0 %v2189_v33 }
 0x4d9   :  { %2197 = vmatprep.subr.bf16.mxu0 %v2366_v0 }
 0x4db   :  { %2092 = vmatmul.mubr.msk.f32.vlgmr.msra.gmra.mrb[10].mxu0 %vm67_vm1, %v2439_v15 }
 0x4dc   :  { %2118 = vmatprep.mubr.msk.f32.mxu0 %vm2367_vm0, %v2368_v1 }
 0x593   :  { %v2550_v34 = vpop.f32.mrb[4].mxu0 }
 0x594   :  { %v2044_v35 = vpop.f32.mrb[5].mxu0 }
 0x59e   :  { %v2552_v36 = vpop.f32.mrb[6].mxu0 }
 0x59f   :  { %v2060_v37 = vpop.f32.mrb[7].mxu0 }
 0x5a6   :  { %v1048_v39 = vpop.f32.mrb[8].mxu0 }
 0x5a7   :  { %v1049_v40 = vadd.f32 %v1048_v39, %v978_v38  ;;  %v2071_v41 = vpop.f32.mrb[9].mxu0 }
 0x5a9   :  { %v1052_v42 = vsel %vm67_vm1, %v1049_v40, 0.0 }
 0x5aa   :  { %1053 = vadd.xlane.f32.xlu0 %v1052_v42 }
 0x5ae   :  { %v1249_v44 = vpop.f32.mrb[10].mxu0 }
 0x5af   :  { %v1250_v45 = vadd.f32 %v1249_v44, %v1182_v43  ;;  %v2093_v47 = vpop.f32.mrb[11].mxu0 }
 0x5b1   :  { %v1253_v48 = vsel %vm346_vm2, %v1250_v45, 0.0 }
 0x5b2   :  { %1254 = vadd.xlane.f32.xlu1 %v1253_v48 }
 0x637   :  { %v1054_v49 = vpop.xlane.xlu0 %1053 }
 0x638   :  { %v1055_v50 = vmul.f32 0.03125, %v1054_v49 }
 0x63a   :  { %v1056_v51 = vsub.f32 %v1049_v40, %v1055_v50 }
 0x63c   :  { %v1057_v53 = vmul.f32 %v1056_v51, %v1056_v51 }
 0x63e   :  { %v1058_v55 = vsel %vm67_vm1, %v1057_v53, 0.0 }
 0x63f   :  { %1059 = vadd.xlane.f32.xlu0 %v1058_v55  ;;  %v1255_v56 = vpop.xlane.xlu1 %1254 }
 0x640   :  { %v1256_v57 = vmul.f32 0.03125, %v1255_v56 }
 0x642   :  { %v1257_v58 = vsub.f32 %v1250_v45, %v1256_v57 }
 0x644   :  { %v1258_v60 = vmul.f32 %v1257_v58, %v1257_v58 }
 0x646   :  { %v1259_v63 = vsel %vm346_vm2, %v1258_v60, 0.0 }
 0x647   :  { %1260 = vadd.xlane.f32.xlu1 %v1259_v63 }
 0x6cc   :  { %v1060_v8 = vpop.xlane.xlu0 %1059 }
 0x6cd   :  { %v1061_v9 = vmul.f32 0.03125, %v1060_v8 }
 0x6cf   :  { %v1062_v11 = vadd.f32 1e-05, %v1061_v9 }
 0x6d1   :  { %2248 = vrsqrt.f32 %v1062_v11 }
 0x6d4   :  { %v1261_v10 = vpop.xlane.xlu1 %1260 }
 0x6d5   :  { %v1262_v12 = vmul.f32 0.03125, %v1261_v10 }
 0x6d7   :  { %v1263_v13 = vadd.f32 1e-05, %v1262_v12 }
 0x6d9   :  { %2250 = vrsqrt.f32 %v1263_v13 }
 0x6db   :  { %v2249_v7 = vpop.eup %2248 }
 0x6dc   :  { %v1064_v16 = vmul.f32 %v2249_v7, %v1056_v51 }
 0x6de   :  { %v1069_v23 = vmul.f32 %v1068_v14, %v1064_v16 }
 0x6e0   :  { %v1074_v26 = vadd.f32 %v1073_v20, %v1069_v23 }
 0x6e2   :  { %v1076_v21 = vmul.f32 0.70710677, %v1074_v26  ;;  %v1075_v16 = vmul.f32 0.5, %v1074_v26 }
 0x6e3   :  { %v2251_v19 = vpop.eup %2250 }
 0x6e4   :  { %v1265_v29 = vmul.f32 %v2251_v19, %v1257_v58  ;;  %v1079_v30 = vand.u32 2147483647, %v1076_v21  ;;  %vm1077_vm7 = vcmp.ge.f32.partialorder %v1076_v21, 0.0 }
 0x6e5   :  { %v1078_v13 = vsel %vm1077_vm7, 1.0, %v2369_v46 }
 0x6e6   :  { %v1270_v32 = vmul.f32 %v1269_v28, %v1265_v29  ;;  %v1080_v33 = vmul.f32 0.3275911, %v1079_v30  ;;  %v1093_v41 = vsub.f32 0.0, %v1079_v30 }
 0x6e8   :  { %v1081_v35 = vadd.f32 1.0, %v1080_v33  ;;  %v1275_v37 = vadd.f32 %v1274_v31, %v1270_v32  ;;  %v1094_v44 = vmul.f32 %v1093_v41, %v1079_v30 }
 0x6ea   :  { %2252 = vrcp.f32 %v1081_v35  ;;  %v1277_v38 = vmul.f32 0.70710677, %v1275_v37  ;;  %v1095_v48 = vmul.f32 1.442695, %v1094_v44  ;;  %v1276_v32 = vmul.f32 0.5, %v1275_v37  ;;  %v1411_v35 = vld [vmem:[#allocation5 + $0x120] sm:$0xff] }
 0x6eb   :  { %v1419_v37 = vld [vmem:[#allocation5 + $0x160] sm:$0xff]  ;;  %v1420_v44 = vld [vmem:[#allocation5 + $0x168] sm:$0xff] }
 0x6ec   :  { %v1280_v39 = vand.u32 2147483647, %v1277_v38  ;;  %vm1278_vm8 = vcmp.ge.f32.partialorder %v1277_v38, 0.0  ;;  %v1413_v38 = vld [vmem:[#allocation5 + $0x130] sm:$0xff] }
 0x6ed   :  { %v1279_v21 = vsel %vm1278_vm8, 1.0, %v2369_v46 }
 0x6ee   :  { %v1281_v40 = vmul.f32 0.3275911, %v1280_v39  ;;  %v1294_v49 = vsub.f32 0.0, %v1280_v39 }
 0x6f0   :  { %v1282_v42 = vadd.f32 1.0, %v1281_v40  ;;  %v1295_v55 = vmul.f32 %v1294_v49, %v1280_v39  ;;  %v1412_v39 = vld [vmem:[#allocation5 + $0x128] sm:$0xff]  ;;  %v973_v40 = vld [vmem:[#allocation2 + $0x38] sm:$0xff] }
 0x6f1   :  { %v2192_v41 = vpack.c.bf16 %v1412_v39, %v1411_v35  ;;  %v1422_v49 = vld [vmem:[#allocation5 + $0x178] sm:$0xff] }
 0x6f2   :  { %2254 = vrcp.f32 %v1282_v42  ;;  %v1296_v63 = vmul.f32 1.442695, %v1295_v55  ;;  %v1414_v42 = vld [vmem:[#allocation5 + $0x138] sm:$0xff] }
 0x6f3   :  { %2256 = vpow2.f32 %v1095_v48  ;;  %v1421_v48 = vld [vmem:[#allocation5 + $0x170] sm:$0xff] }
 0x6f4   :  { %v2253_v43 = vpop.eup %2252  ;;  %2258 = vpow2.f32 %v1296_v63 }
 0x6f5   :  { %v1084_v45 = vmul.f32 1.0614054, %v2253_v43 }
 0x6f7   :  { %v1085_v47 = vadd.f32 -1.4531521, %v1084_v45  ;;  %v1424_v45 = vld [vmem:[#allocation2 + $0x48] sm:$0xff] }
 0x6f9   :  { %v1086_v50 = vmul.f32 %v2253_v43, %v1085_v47  ;;  %v2204_v47 = vpack.c.bf16 %v1420_v44, %v1419_v37 }
 0x6fb   :  { %v1087_v51 = vadd.f32 1.4214138, %v1086_v50  ;;  %v2207_v50 = vpack.c.bf16 %v1422_v49, %v1421_v48 }
 0x6fc   :  { %v2255_v53 = vpop.eup %2254 }
 0x6fd   :  { %v1088_v56 = vmul.f32 %v2253_v43, %v1087_v51  ;;  %v1285_v57 = vmul.f32 1.0614054, %v2255_v53  ;;  %v2257_v8 = vpop.eup %2256 }
 0x6fe   :  { %v2259_v28 = vpop.eup %2258 }
 0x6ff   :  { %v1089_v58 = vadd.f32 -0.28449672, %v1088_v56  ;;  %v1286_v60 = vadd.f32 -1.4531521, %v1285_v57  ;;  %v2600_v57 = vld [vmem:[%s2690_s2 + $0x18] sm:$0x7f] }
 0x701   :  { %v1090_v2 = vmul.f32 %v2253_v43, %v1089_v58  ;;  %v1287_v3 = vmul.f32 %v2255_v53, %v1286_v60  ;;  %v1430_v58 = vrot.slane %v2600_v57, %v2449_v18 }
 0x703   :  { %v1091_v4 = vadd.f32 0.2548296, %v1090_v2  ;;  %v1288_v5 = vadd.f32 1.4214138, %v1287_v3 }
 0x705   :  { %v1092_v61 = vmul.f32 %v2253_v43, %v1091_v4  ;;  %v1289_v6 = vmul.f32 %v2255_v53, %v1288_v5  ;;  %v2195_v43 = vpack.c.bf16 %v1414_v42, %v1413_v38 }
 0x707   :  { %v1097_v9 = vmul.f32 %v2257_v8, %v1092_v61  ;;  %v1290_v11 = vadd.f32 -0.28449672, %v1289_v6  ;;  %v2370_v8 = vmov 0  }
 0x708   :  { %2222 = vset.pattern.permute.xlu0 %v2370_v8  ;;  %2223 = vset.pattern.permute.xlu1 %v2370_v8 }
 0x709   :  { %v1098_v10 = vsub.f32 1.0, %v1097_v9  ;;  %v1291_v12 = vmul.f32 %v2255_v53, %v1290_v11 }
 0x70b   :  { %v1099_v14 = vmul.f32 %v1098_v10, %v1078_v13  ;;  %v1292_v7 = vadd.f32 0.2548296, %v1291_v12 }
 0x70d   :  { %v1100_v20 = vadd.f32 1.0, %v1099_v14  ;;  %v1293_v23 = vmul.f32 %v2255_v53, %v1292_v7 }
 0x70f   :  { %v1101_v19 = vmul.f32 %v1100_v20, %v1075_v16  ;;  %v1298_v29 = vmul.f32 %v2259_v28, %v1293_v23  ;;  %v522_v20 = vld [vmem:[#allocation2 + $0x28] sm:$0xff]  ;;  %v974_v23 = vld [vmem:[#allocation2 + $0x40] sm:$0xff]  ;;  %v1426_v28 = vld [vmem:[#allocation2 + $0x58] sm:$0xff] }
 0x711   :  { %2081 = vmatmul.mubr.msk.f32.vlgmr.msra.gmra.mrb[8].mxu1 %vm67_vm1, %v1101_v19  ;;  %v1299_v30 = vsub.f32 1.0, %v1298_v29  ;;  %v62_v19 = vld [vmem:[#allocation2 + $0x10] sm:$0xff]  ;;  %v1415_v29 = vld [vmem:[#allocation5 + $0x140] sm:$0xff] }
 0x712   :  { %2096 = vmatprep.mubr.msk.f32.mxu1 %vm2367_vm0, %v2368_v1 }
 0x713   :  { %v1300_v31 = vmul.f32 %v1299_v30, %v1279_v21  ;;  %v1416_v30 = vld [vmem:[#allocation5 + $0x148] sm:$0xff]  ;;  %v1417_v21 = vld [vmem:[#allocation5 + $0x150] sm:$0xff] }
 0x715   :  { %v1301_v33 = vadd.f32 1.0, %v1300_v31  ;;  %v2198_v31 = vpack.c.bf16 %v1416_v30, %v1415_v29 }
 0x717   :  { %v1302_v26 = vmul.f32 %v1301_v33, %v1276_v32  ;;  %v1418_v32 = vld [vmem:[#allocation5 + $0x158] sm:$0xff]  ;;  %2199 = vmatpush3.bf16.msra.mxu0 %v2198_v31 }
 0x718   :  { %v2201_v33 = vpack.c.bf16 %v1418_v32, %v1417_v21  ;;  %2200 = vmatprep.subr.bf16.mxu0 %v2366_v0 }
 0x719   :  { %2095 = vmatpush3.xpose.msk.msra.mxu1 %vm67_vm1, %v1302_v26 }
 0x71a   :  { %2191 = vmatprep.subr.bf16.mxu1 %v2366_v0 }
 0x71b   :  { %2202 = vmatpush3.bf16.msra.mxu0 %v2201_v33 }
 0x71c   :  { %2097 = vmatmul.mubr.msk.f32.vlgmr.msra.gmra.mrb[10].mxu1 %vm67_vm1, %v973_v40  ;;  %2132 = vmatprep.subr.mxu0 %v2368_v1 }
 0x71d   :  { %2193 = vmatpush3.bf16.msra.mxu1 %v2192_v41  ;;  %2107 = vmatprep.mubr.msk.f32.mxu1 %vm2367_vm0, %v2368_v1 }
 0x71e   :  { %2194 = vmatprep.subr.bf16.mxu1 %v2366_v0 }
 0x721   :  { %2196 = vmatpush3.bf16.msra.mxu1 %v2195_v43 }
 0x722   :  { %2203 = vmatprep.subr.bf16.mxu1 %v2366_v0 }
 0x724   :  { %2108 = vmatmul.mubr.msk.f32.vlgmr.msra.gmra.mrb[12].mxu1 %vm67_vm1, %v1424_v45 }
 0x725   :  { %2205 = vmatpush3.bf16.msra.mxu1 %v2204_v47  ;;  %2129 = vmatprep.mubr.msk.f32.mxu1 %vm2367_vm0, %v2368_v1  ;;  %v1520_v47 = vrot.slane %v2600_v57, %v2470_v52  ;;  %v1721_v52 = vrot.slane %v2600_v57, %v2480_v59 }
 0x726   :  { %2206 = vmatprep.subr.bf16.mxu1 %v2366_v0 }
 0x729   :  { %2208 = vmatpush3.bf16.msra.mxu1 %v2207_v50 }
 0x72c   :  { %2130 = vmatmul.mubr.msk.f32.vlgmr.msra.gmra.mrb[14].mxu1 %vm67_vm1, %v2439_v15  ;;  %v1634_v15 = vrot.slane %v2600_v57, %v2459_v24 }
 0x7e4   :  { %v2595_v51 = vpop.f32.mrb[8].mxu1 }
 0x7e5   :  { %v2082_v53 = vpop.f32.mrb[9].mxu1 }
 0x7ef   :  { %v1380_v55 = vpop.f32.mrb[10].mxu1 }
 0x7f0   :  { %v2098_v56 = vpop.f32.mrb[11].mxu1 }
 0x7f7   :  { %v1500_v60 = vpop.f32.mrb[12].mxu1 }
 0x7f8   :  { %v1501_v63 = vadd.f32 %v1500_v60, %v1430_v58  ;;  %v2109_v2 = vpop.f32.mrb[13].mxu1 }
 0x7fa   :  { %v1504_v3 = vsel %vm67_vm1, %v1501_v63, 0.0 }
 0x7fb   :  { %1505 = vadd.xlane.f32.xlu0 %v1504_v3 }
 0x7ff   :  { %v1701_v4 = vpop.f32.mrb[14].mxu1 }
 0x800   :  { %v1702_v5 = vadd.f32 %v1701_v4, %v1634_v15  ;;  %v2131_v61 = vpop.f32.mrb[15].mxu1 }
 0x802   :  { %v1705_v6 = vsel %vm346_vm2, %v1702_v5, 0.0 }
 0x803   :  { %1706 = vadd.xlane.f32.xlu1 %v1705_v6 }
 0x888   :  { %v1506_v9 = vpop.xlane.xlu0 %1505 }
 0x889   :  { %v1507_v18 = vmul.f32 0.03125, %v1506_v9 }
 0x88b   :  { %v1508_v11 = vsub.f32 %v1501_v63, %v1507_v18 }
 0x88d   :  { %v1509_v10 = vmul.f32 %v1508_v11, %v1508_v11 }
 0x88f   :  { %v1510_v12 = vsel %vm67_vm1, %v1509_v10, 0.0 }
 0x890   :  { %1511 = vadd.xlane.f32.xlu0 %v1510_v12  ;;  %v1707_v13 = vpop.xlane.xlu1 %1706 }
 0x891   :  { %v1708_v14 = vmul.f32 0.03125, %v1707_v13 }
 0x893   :  { %v1709_v7 = vsub.f32 %v1702_v5, %v1708_v14 }
 0x895   :  { %v1710_v24 = vmul.f32 %v1709_v7, %v1709_v7 }
 0x897   :  { %v1711_v16 = vsel %vm346_vm2, %v1710_v24, 0.0 }
 0x898   :  { %1712 = vadd.xlane.f32.xlu1 %v1711_v16 }
 0x8a6   :  { %853 = vperm.xlu0 %2222, %v522_v20  }
 0x8a9   :  { %1305 = vperm.xlu1 %2223, %v974_v23  }
 0x8ad   :  { %1757 = vperm.xlu1 %2223, %v1426_v28  }
 0x8b1   :  { %399 = vperm.xlu1 %2223, %v62_v19  }
 0x91d   :  { %v1512_v35 = vpop.xlane.xlu0 %1511 }
 0x91e   :  { %v1513_v39 = vmul.f32 0.03125, %v1512_v35 }
 0x920   :  { %v1514_v26 = vadd.f32 1e-05, %v1513_v39 }
 0x922   :  { %2260 = vrsqrt.f32 %v1514_v26 }
 0x925   :  { %v854_v40 = vpop.permute.xlu0 %853  ;;  %v1713_v41 = vpop.xlane.xlu1 %1712 }
 0x926   :  { %v929_v38 = vadd.f32 %v2552_v36, %v854_v40  ;;  %v1714_v42 = vmul.f32 0.03125, %v1713_v41  ;;  %v1525_v36 = vrot.slane %v2600_v57, %v2473_v54  ;;  %v1726_v54 = vrot.slane %v2600_v57, %v2483_v62 }
 0x928   :  { %v932_v43 = vsel %vm478_vm9, %v929_v38, -inf  ;;  %v1715_v37 = vadd.f32 1e-05, %v1714_v42 }
 0x929   :  { %v933_v44 = vrot.slane %v932_v43, 4  ;;  %v1306_v45 = vpop.permute.xlu1 %1305 }
 0x92a   :  { %2262 = vrsqrt.f32 %v1715_v37  ;;  %v1381_v0 = vadd.f32 %v1380_v55, %v1306_v45 }
 0x92b   :  { %v934_v48 = vmax.f32 %v932_v43, %v933_v44 }
 0x92c   :  { %v2261_v49 = vpop.eup %2260  ;;  %v1384_v50 = vsel %vm478_vm9, %v1381_v0, -inf }
 0x92d   :  { %v1516_v53 = vmul.f32 %v2261_v49, %v1508_v11  ;;  %v935_v56 = vrot.slane %v934_v48, 2  ;;  %v1385_v58 = vrot.slane %v1384_v50, 4 }
 0x92f   :  { %v1521_v60 = vmul.f32 %v1520_v47, %v1516_v53  ;;  %v936_v63 = vmax.f32 %v934_v48, %v935_v56  ;;  %v1386_v2 = vmax.f32 %v1384_v50, %v1385_v58 }
 0x931   :  { %v937_v3 = vrot.slane %v936_v63, 1  ;;  %v1387_v15 = vrot.slane %v1386_v2, 2  ;;  %v2619_v4 = vadd.f32 %v1525_v36, %v1521_v60 }
 0x933   :  { %v938_v55 = vmax.f32 %v936_v63, %v937_v3  ;;  %v1388_v5 = vmax.f32 %v1386_v2, %v1387_v15  ;;  %v2624_v61 = vmul.f32 0.70710677, %v2619_v4 }
 0x934   :  { %v2263_v6 = vpop.eup %2262 }
 0x935   :  { %v939_v8 = vsub.f32 %v929_v38, %v938_v55  ;;  %v1717_v9 = vmul.f32 %v2263_v6, %v1709_v7  ;;  %v1389_v18 = vrot.slane %v1388_v5, 1  ;;  %v1531_v11 = vand.u32 2147483647, %v2624_v61 }
 0x936   :  { %vm1529_vm10 = vcmp.ge.f32.partialorder %v2624_v61, 0.0 }
 0x937   :  { %v940_v10 = vmul.f32 1.442695, %v939_v8  ;;  %v1722_v12 = vmul.f32 %v1721_v52, %v1717_v9  ;;  %v1390_v13 = vmax.f32 %v1388_v5, %v1389_v18  ;;  %v1532_v14 = vmul.f32 0.3275911, %v1531_v11 }
 0x938   :  { %v1545_v19 = vsub.f32 0.0, %v1531_v11 }
 0x939   :  { %2264 = vpow2.f32 %v940_v10  ;;  %v1391_v24 = vsub.f32 %v1381_v0, %v1390_v13  ;;  %v2629_v59 = vadd.f32 %v1726_v54, %v1722_v12  ;;  %v1533_v16 = vadd.f32 1.0, %v1532_v14 }
 0x93a   :  { %v1546_v32 = vmul.f32 %v1545_v19, %v1531_v11 }
 0x93b   :  { %v1392_v20 = vmul.f32 1.442695, %v1391_v24  ;;  %v2632_v23 = vmul.f32 0.70710677, %v2629_v59  ;;  %2266 = vrcp.f32 %v1533_v16  ;;  %v1530_v24 = vsel %vm1529_vm10, 1.0, %v2369_v46 }
 0x93c   :  { %v1547_v43 = vmul.f32 1.442695, %v1546_v32 }
 0x93d   :  { %2268 = vpow2.f32 %v1392_v20  ;;  %v1732_v7 = vand.u32 2147483647, %v2632_v23  ;;  %vm1730_vm11 = vcmp.ge.f32.partialorder %v2632_v23, 0.0  ;;  %v1425_v23 = vld [vmem:[#allocation2 + $0x50] sm:$0xff] }
 0x93f   :  { %v1733_v62 = vmul.f32 0.3275911, %v1732_v7  ;;  %v1746_v40 = vsub.f32 0.0, %v1732_v7 }
 0x941   :  { %v1734_v28 = vadd.f32 1.0, %v1733_v62  ;;  %v1747_v0 = vmul.f32 %v1746_v40, %v1732_v7 }
 0x943   :  { %v2265_v29 = vpop.eup %2264  ;;  %2270 = vrcp.f32 %v1734_v28  ;;  %v1748_v63 = vmul.f32 1.442695, %v1747_v0 }
 0x944   :  { %v942_v30 = vsel %vm478_vm9, %v2265_v29, 0.0  ;;  %2272 = vpow2.f32 %v1547_v43 }
 0x945   :  { %v943_v21 = vrot.slane %v942_v30, 4  ;;  %v2267_v31 = vpop.eup %2266 }
 0x946   :  { %v1536_v39 = vmul.f32 1.0614054, %v2267_v31 }
 0x947   :  { %v2269_v33 = vpop.eup %2268  ;;  %v944_v35 = vadd.f32 %v943_v21, %v942_v30  ;;  %v1527_v30 = vmul.f32 0.5, %v2619_v4  ;;  %v1728_v4 = vmul.f32 0.5, %v2629_v59  ;;  %v1758_v59 = vpop.permute.xlu1 %1757 }
 0x948   :  { %v1394_v26 = vsel %vm478_vm9, %v2269_v33, 0.0  ;;  %v1537_v42 = vadd.f32 -1.4531521, %v1536_v39  ;;  %v1731_v39 = vsel %vm1730_vm11, 1.0, %v2369_v46 }
 0x949   :  { %v945_v41 = vrot.slane %v944_v35, 2  ;;  %v1395_v38 = vrot.slane %v1394_v26, 4 }
 0x94a   :  { %v1538_v45 = vmul.f32 %v2267_v31, %v1537_v42 }
 0x94b   :  { %v1396_v37 = vadd.f32 %v1395_v38, %v1394_v26  ;;  %v946_v44 = vadd.f32 %v945_v41, %v944_v35  ;;  %v2651_v41 = vsub.s32 3, %v2446_v17 }
 0x94c   :  { %v1539_v50 = vadd.f32 1.4214138, %v1538_v45 }
 0x94d   :  { %v2271_v47 = vpop.eup %2270  ;;  %v1397_v48 = vrot.slane %v1396_v37, 2  ;;  %v947_v49 = vrot.slane %v946_v44, 1  ;;  %v1105_v38 = vrot.slane %v2557_v27, %v2651_v41 }
 0x94e   :  { %v1737_v53 = vmul.f32 1.0614054, %v2271_v47  ;;  %v1540_v58 = vmul.f32 %v2267_v31, %v1539_v50  ;;  %v2273_v18 = vpop.eup %2272 }
 0x94f   :  { %v948_v56 = vadd.f32 %v947_v49, %v946_v44  ;;  %v1398_v36 = vadd.f32 %v1397_v48, %v1396_v37  ;;  %v1176_v42 = vadd.f32 %v2595_v51, %v1105_v38  ;;  %v400_v37 = vpop.permute.xlu1 %399 }
 0x950   :  { %v1738_v60 = vadd.f32 -1.4531521, %v1737_v53  ;;  %v1541_v2 = vadd.f32 -0.28449672, %v1540_v58  ;;  %v475_v44 = vadd.f32 %v2512_v25, %v400_v37 }
 0x951   :  { %2274 = vrcp.f32 %v948_v56  ;;  %v1399_v3 = vrot.slane %v1398_v36, 1 }
 0x952   :  { %v1739_v15 = vmul.f32 %v2271_v47, %v1738_v60  ;;  %v1542_v55 = vmul.f32 %v2267_v31, %v1541_v2  ;;  %2276 = vpow2.f32 %v1748_v63  ;;  %v479_v45 = vsel %vm478_vm9, %v475_v44, -inf }
 0x953   :  { %v1400_v52 = vadd.f32 %v1399_v3, %v1398_v36  ;;  %v480_v0 = vrot.slane %v479_v45, 4 }
 0x954   :  { %v1740_v5 = vadd.f32 1.4214138, %v1739_v15  ;;  %v1543_v6 = vadd.f32 0.2548296, %v1542_v55 }
 0x955   :  { %2278 = vrcp.f32 %v1400_v52 }
 0x956   :  { %v1741_v8 = vmul.f32 %v2271_v47, %v1740_v5  ;;  %v1544_v9 = vmul.f32 %v2267_v31, %v1543_v6 }
 0x958   :  { %v1742_v54 = vadd.f32 -0.28449672, %v1741_v8  ;;  %v1549_v11 = vmul.f32 %v2273_v18, %v1544_v9 }
 0x95a   :  { %v1743_v10 = vmul.f32 %v2271_v47, %v1742_v54  ;;  %v1550_v13 = vsub.f32 1.0, %v1549_v11 }
 0x95b   :  { %v2275_v12 = vpop.eup %2274 }
 0x95c   :  { %v950_v14 = vmul.f32 %v2275_v12, %v2265_v29  ;;  %v1744_v16 = vadd.f32 0.2548296, %v1743_v10  ;;  %v1551_v20 = vmul.f32 %v1550_v13, %v1530_v24  ;;  %v2277_v7 = vpop.eup %2276 }
 0x95e   :  { %v951_v62 = vsel %vm478_vm9, %v950_v14, 0.0  ;;  %v1745_v28 = vmul.f32 %v2271_v47, %v1744_v16  ;;  %v1552_v21 = vadd.f32 1.0, %v1551_v20  ;;  %v481_v47 = vmax.f32 %v479_v45, %v480_v0 }
 0x95f   :  { %v2279_v19 = vpop.eup %2278  ;;  %952 = vadd.xlane.f32.xlu1 %v951_v62 }
 0x960   :  { %v1402_v31 = vmul.f32 %v2279_v19, %v2269_v33  ;;  %v1750_v61 = vmul.f32 %v2277_v7, %v1745_v28  ;;  %v1553_v32 = vmul.f32 %v1552_v21, %v1527_v30  ;;  %v482_v17 = vrot.slane %v481_v47, 2 }
 0x962   :  { %v1403_v29 = vsel %vm478_vm9, %v1402_v31, 0.0  ;;  %v1751_v35 = vsub.f32 1.0, %v1750_v61  ;;  %2119 = vmatmul.mubr.msk.f32.vlgmr.msra.gmra.mrb[12].mxu0 %vm67_vm1, %v1553_v32  ;;  %v483_v48 = vmax.f32 %v481_v47, %v482_v17 }
 0x963   :  { %1404 = vadd.xlane.f32.xlu0 %v1403_v29  ;;  %2134 = vmatprep.mubr.msk.f32.mxu0 %vm2367_vm0, %v2368_v1 }
 0x964   :  { %v1752_v26 = vmul.f32 %v1751_v35, %v1731_v39  ;;  %v484_v49 = vrot.slane %v483_v48, 1  ;;  %v2288_v39 = vld [vmem:[%s2690_s2 + $0x8] sm:$0x7f] }
 0x966   :  { %v1753_v40 = vadd.f32 1.0, %v1752_v26  ;;  %v485_v27 = vmax.f32 %v483_v48, %v484_v49  ;;  %v653_v26 = vrot.slane %v2288_v39, %v2651_v41 }
 0x968   :  { %v1754_v33 = vmul.f32 %v1753_v40, %v1728_v4  ;;  %v486_v56 = vsub.f32 %v475_v44, %v485_v27  ;;  %v724_v40 = vadd.f32 %v2550_v34, %v653_v26 }
 0x96a   :  { %2133 = vmatpush3.xpose.msk.msra.mxu0 %vm67_vm1, %v1754_v33  ;;  %v487_v51 = vmul.f32 1.442695, %v486_v56 }
 0x96c   :  { %2280 = vpow2.f32 %v487_v51 }
 0x96d   :  { %2135 = vmatmul.mubr.msk.f32.vlgmr.msra.gmra.mrb[14].mxu0 %vm67_vm1, %v1425_v23  ;;  %v1557_v23 = vrot.slane %v2600_v57, %v2651_v41 }
 0x976   :  { %v2281_v52 = vpop.eup %2280 }
 0x977   :  { %v489_v6 = vsel %vm478_vm9, %v2281_v52, 0.0 }
 0x978   :  { %v490_v18 = vrot.slane %v489_v6, 4 }
 0x97a   :  { %v491_v54 = vadd.f32 %v490_v18, %v489_v6 }
 0x97c   :  { %v492_v11 = vrot.slane %v491_v54, 2 }
 0x97e   :  { %v493_v13 = vadd.f32 %v492_v11, %v491_v54 }
 0x980   :  { %v494_v16 = vrot.slane %v493_v13, 1 }
 0x982   :  { %v495_v62 = vadd.f32 %v494_v16, %v493_v13 }
 0x9ec   :  { %v953_v35 = vpop.xlane.xlu1 %952 }
 0x9ed   :  { %v954_v4 = vmul.f32 0.5, %v953_v35 }
 0x9ef   :  { %v955_v33 = vmul.f32 %v954_v4, %v724_v40 }
 0x9f0   :  { %v1405_v46 = vpop.xlane.xlu0 %1404 }
 0x9f1   :  { %v1406_v43 = vmul.f32 0.5, %v1405_v46 }
 0x9f3   :  { %v1407_v1 = vmul.f32 %v1406_v43, %v1176_v42 }
 0x9f5   :  { %1865 = vrot.lane.b32.xlu0 %v1407_v1, %s2371_s22 }
 0xa35   :  { %v1627_v50 = vpop.f32.mrb[12].mxu0 }
 0xa36   :  { %v2120_v53 = vpop.f32.mrb[13].mxu0  ;;  %v1628_v46 = vadd.f32 %v1627_v50, %v1557_v23 }
 0xa40   :  { %v1832_v58 = vpop.f32.mrb[14].mxu0 }
 0xa41   :  { %v1833_v36 = vadd.f32 %v1832_v58, %v1758_v59  ;;  %v2136_v60 = vpop.f32.mrb[15].mxu0  ;;  %v2289_v59 = vld [vmem:[%s2690_s2] sm:$0x7f]  ;;  %s2334_s2 = scalar_lea.vmem %s1885_s30, 128 }
 0xa42   :  { %v195_v37 = vrot.slane %v2289_v59, %v2651_v41  ;;  %p2335_p2 = scmp.ne.s32.totalorder %s1885_s30, %s2334_s2  ;;  %p2340_p4 = scmp.lt.s32.totalorder %s2334_s2, %s2334_s2 }
 0xa43   :  { %v1836_v63 = vsel %vm478_vm9, %v1833_v36, -inf }
 0xa44   :  { %v1837_v2 = vrot.slane %v1836_v63, 4  ;;  %v266_v44 = vadd.f32 %v2510_v22, %v195_v37  ;;  %p2341_p5 = por %p2340_p4, %p2339_p3 }
 0xa46   :  { %v1838_v25 = vmax.f32 %v1836_v63, %v1837_v2  ;;  %p2342_p6 = pnand %p2341_p5, %p2335_p2 }
 0xa48   :  { %v1839_v3 = vrot.slane %v1838_v25, 2 }
 0xa4a   :  { %v1840_v15 = vmax.f32 %v1838_v25, %v1839_v3 }
 0xa4c   :  { %v1841_v55 = vrot.slane %v1840_v15, 1 }
 0xa4e   :  { %v1842_v5 = vmax.f32 %v1840_v15, %v1841_v55 }
 0xa50   :  { %v1843_v8 = vsub.f32 %v1833_v36, %v1842_v5 }
 0xa52   :  { %v1844_v9 = vmul.f32 1.442695, %v1843_v8 }
 0xa54   :  { %2282 = vpow2.f32 %v1844_v9 }
 0xa55   :  { %2284 = vrcp.f32 %v495_v62 }
 0xa5e   :  { %v2283_v10 = vpop.eup %2282 }
 0xa5f   :  { %v1846_v12 = vsel %vm478_vm9, %v2283_v10, 0.0  ;;  %v2285_v30 = vpop.eup %2284 }
 0xa60   :  { %v1847_v14 = vrot.slane %v1846_v12, 4  ;;  %v497_v32 = vmul.f32 %v2285_v30, %v2281_v52 }
 0xa62   :  { %v1848_v24 = vadd.f32 %v1847_v14, %v1846_v12  ;;  %v498_v29 = vsel %vm478_vm9, %v497_v32, 0.0 }
 0xa64   :  { %v1849_v20 = vrot.slane %v1848_v24, 2 }
 0xa66   :  { %v1850_v7 = vadd.f32 %v1849_v20, %v1848_v24 }
 0xa67   :  { %v1866_v47 = vpop.permute.xlu0 %1865 }
 0xa68   :  { %v1851_v28 = vrot.slane %v1850_v7, 1 }
 0xa6a   :  { %v1852_v19 = vadd.f32 %v1851_v28, %v1850_v7 }
 0xa6c   :  { %2286 = vrcp.f32 %v1852_v19 }
 0xa76   :  { %v2287_v21 = vpop.eup %2286 }
 0xa77   :  { %v1854_v31 = vmul.f32 %v2287_v21, %v2283_v10 }
 0xa79   :  { %v1855_v61 = vsel %vm478_vm9, %v1854_v31, 0.0 }
 0xa7a   :  { %1856 = vadd.xlane.f32.xlu1 %v1855_v61 }
 0xa7e   :  { %499 = vadd.xlane.f32.xlu1 %v498_v29 }
 0xa8f   :  { %1861 = vrot.lane.b32.xlu1 %v955_v33, %s2372_s25 }
 0xb07   :  { %v1857_v38 = vpop.xlane.xlu1 %1856 }
 0xb08   :  { %v1858_v42 = vmul.f32 0.5, %v1857_v38 }
 0xb0a   :  { %v1859_v43 = vmul.f32 %v1858_v42, %v1628_v46 }
 0xb0b   :  { %v500_v1 = vpop.xlane.xlu1 %499 }
 0xb0c   :  { %1869 = vrot.lane.b32.xlu1 %v1859_v43, %s2373_s26  ;;  %v502_v34 = vmul.f32 0.5, %v500_v1 }
 0xb0e   :  { %v503_v45 = vmul.f32 %v502_v34, %v266_v44 }
 0xb0f   :  { %v1862_v0 = vpop.permute.xlu1 %1861 }
 0xb10   :  { %v1872_v57 = vsel %vm67_vm1, %v503_v45, %v1862_v0 }
 0xb11   :  { %v1874_v17 = vsel %vm1873_vm12, %v1872_v57, %v1866_v47 }
 0xb7e   :  { %v1870_v48 = vpop.permute.xlu1 %1869 }
 0xb7f   :  { %v1876_v49 = vsel %vm1875_vm13, %v1874_v17, %v1870_v48 }
 0xb80   :  { %1877 = vst [vmem:[#allocation7] sm:$0xff] %v1876_v49 }
 0xb81   :  { %2345 = shalt.err (!%p2342_p6)
}
 0xb82   :  { %s2346_s7 = scalar_lea.hbm %s2692_s4, 128 }
 0xb83   :  { %p2347_p7 = scmp.ne.s32.totalorder %s2692_s4, %s2346_s7  ;;  %p2350_p8 = scmp.lt.u32.totalorder %s2346_s7, %s2692_s4 }
 0xb85   :  { %p2352_p9 = pnand %p2350_p8, %p2347_p7 }
 0xb87   :  { %2355 = shalt.err (!%p2352_p9)
}
 0xb88   :  { %1887 = dma.vmem_to_hbm [thread:$0]  %s1885_s30, 128, %s2692_s4, [#allocation4]  }
 0xb89   :  { %2360 = dma.done.wait [#allocation4], 128  }
 0xb8a   :  { %2361 = vsyncadd [#allocation4], 4294967168 }
 0xb8b   :  { %1891 = vsyncpa [#allocation3], 1 }
 0xb8c   :  { %1892 = vsyncpa [#allocation6], 1 }
 0xb8d   :  { %1893 = vsyncpa [#allocation4], 1 }

</bundles_post_ra>
